<compile_context>
chip_gen: v7x
topology: tpu7x:2x2x1
jax: 0.10.0
libtpu: 0.0.40
codegen_flags: <defaults>
</compile_context>

<pallas_src>
import jax
import jax.numpy as jnp
from jax import lax
from jax.experimental import pallas as pl
from jax.experimental.pallas import tpu as pltpu


def double_conv_kernel(x_ref, w1_ref, s1_ref, b1_ref, w2_ref, s2_ref, b2_ref,
                       o_ref, shf1_ref, shf2_ref):
    # x_ref   : (1, H, W, Cin)     bf16  one image per grid step
    # w*_ref  : (3, 3*C, Cout)     bf16  dx-merged weights  [dy, dx*C + c, co]
    # s*/b*   : (1, C)             f32   folded conv-bias + BN scale / bias
    # o_ref   : (1, H, W, Cout)    bf16
    # shf*_ref: VMEM (H+2, W, 3*C) bf16  three dx-shifted zero-padded slabs,
    #           laid side by side on the lane axis.
    H, W = x_ref.shape[1], x_ref.shape[2]

    def build_shifted(shf_ref, img):
        # shf_ref[y, x, dx*C + c] == zero_padded_img[y, x + dx, c]
        c = shf_ref.shape[2] // 3
        # Halo-only zeroing (interior is rewritten every step; no program_id
        # gating so megacore 'parallel' splitting is safe).
        zrow = jnp.zeros((1, W, 3 * c), jnp.bfloat16)
        zcol = jnp.zeros((H, 1, c), jnp.bfloat16)
        shf_ref[0:1, :, :] = zrow                      # padded top row
        shf_ref[H + 1:H + 2, :, :] = zrow              # padded bottom row
        shf_ref[1:H + 1, 0:1, 0:c] = zcol              # left pad  (dx = 0 slab)
        shf_ref[1:H + 1, W - 1:W, 2 * c:3 * c] = zcol  # right pad (dx = 2 slab)
        # Three dx-shifted copies -- the only per-conv data movement
        # (replaces the previous 9 unaligned window repacks).
        shf_ref[1:H + 1, 1:W, 0:c] = img[:, 0:W - 1, :]          # dx = 0
        shf_ref[1:H + 1, :, c:2 * c] = img                       # dx = 1
        shf_ref[1:H + 1, 0:W - 1, 2 * c:3 * c] = img[:, 1:W, :]  # dx = 2

    def conv_bn_relu(shf_ref, w_ref, s_ref, b_ref):
        c3, c_out = w_ref.shape[1], w_ref.shape[2]
        acc = jnp.zeros((H * W, c_out), jnp.float32)
        for dy in range(3):
            # dy slice is a pure leading-dim offset (no repack); the reshape
            # is layout-preserving when W % 8 == 0.  One (H*W, 3C) x (3C, Co)
            # bf16 MXU matmul per dy with f32 accumulation (K = 3*Cin instead
            # of 9 matmuls with K = Cin).
            a = shf_ref[dy:dy + H].reshape(H * W, c3)
            acc = acc + jnp.dot(a, w_ref[dy],
                                preferred_element_type=jnp.float32)
        # Folded conv-bias + BN, then ReLU, in f32.
        return jnp.maximum(acc * s_ref[...] + b_ref[...], 0.0)

    # ---- conv1 --------------------------------------------------------------
    build_shifted(shf1_ref, x_ref[0])
    h = conv_bn_relu(shf1_ref, w1_ref, s1_ref, b1_ref)

    # ---- conv2: intermediate never leaves VMEM; cast to bf16 exactly once ---
    cmid = w1_ref.shape[2]
    build_shifted(shf2_ref, h.astype(jnp.bfloat16).reshape(H, W, cmid))
    out = conv_bn_relu(shf2_ref, w2_ref, s2_ref, b2_ref)

    cout = w2_ref.shape[2]
    o_ref[...] = out.astype(o_ref.dtype).reshape(1, H, W, cout)


def double_conv_nhwc(x_nhwc, params):
    """Fused (Conv3x3 -> BN -> ReLU) x 2 on an NHWC input; returns bf16 NHWC."""
    N, H, W, Cin = x_nhwc.shape
    w1, w2 = params["w1"], params["w2"]            # (3, 3*Cin, Cmid), (3, 3*Cmid, Cout)
    Cmid, Cout = w1.shape[-1], w2.shape[-1]
    assert w1.shape[1] == 3 * Cin and w2.shape[1] == 3 * Cmid
    if x_nhwc.dtype != jnp.bfloat16:
        x_nhwc = x_nhwc.astype(jnp.bfloat16)       # surrounding net should feed bf16
    return pl.pallas_call(
        double_conv_kernel,
        out_shape=jax.ShapeDtypeStruct((N, H, W, Cout), jnp.bfloat16),
        grid_spec=pltpu.PrefetchScalarGridSpec(
            num_scalar_prefetch=0,
            grid=(N,),
            in_specs=[
                pl.BlockSpec((1, H, W, Cin), lambda n: (n, 0, 0, 0)),
                pl.BlockSpec((3, 3 * Cin, Cmid), lambda n: (0, 0, 0)),
                pl.BlockSpec((1, Cmid), lambda n: (0, 0)),
                pl.BlockSpec((1, Cmid), lambda n: (0, 0)),
                pl.BlockSpec((3, 3 * Cmid, Cout), lambda n: (0, 0, 0)),
                pl.BlockSpec((1, Cout), lambda n: (0, 0)),
                pl.BlockSpec((1, Cout), lambda n: (0, 0)),
            ],
            out_specs=pl.BlockSpec((1, H, W, Cout), lambda n: (n, 0, 0, 0)),
            scratch_shapes=[
                pltpu.VMEM((H + 2, W, 3 * Cin), jnp.bfloat16),
                pltpu.VMEM((H + 2, W, 3 * Cmid), jnp.bfloat16),
            ],
        ),
        compiler_params=pltpu.CompilerParams(
            dimension_semantics=("parallel",)),
    )(x_nhwc, w1, params["scale1"], params["bias1"],
      w2, params["scale2"], params["bias2"])


def double_conv_nchw(x_nchw, params):
    # PyTorch-facing adapter.  Use only at the model boundary: each transpose
    # is a full HBM pass, so inner UNet blocks should stay NHWC end-to-end.
    y = double_conv_nhwc(jnp.transpose(x_nchw, (0, 2, 3, 1)), params)
    return jnp.transpose(y, (0, 3, 1, 2))


def fold_bn(conv_bias, gamma, beta, mean, var, eps=1e-5):
    """Fold conv bias + inference BatchNorm into per-channel scale/bias."""
    scale = gamma / jnp.sqrt(var + eps)
    bias = beta + (conv_bias - mean) * scale
    return (scale.reshape(1, -1).astype(jnp.float32),
            bias.reshape(1, -1).astype(jnp.float32))


def init_params(key, in_channels, out_channels, mid_channels=None):
    if mid_channels is None:
        mid_channels = out_channels
    ks = jax.random.split(key, 12)

    def conv_w(k, cin, cout):
        # PyTorch (Cout, Cin, 3, 3) -> HWIO (3,3,Cin,Cout) -> dx-merged
        # (3, 3*Cin, Cout), bf16 (pre-reshaped once in the wrapper/params).
        w = jax.random.normal(k, (cout, cin, 3, 3), jnp.float32) * 0.1
        w = jnp.transpose(w, (2, 3, 1, 0))
        return w.reshape(3, 3 * cin, cout).astype(jnp.bfloat16)

    w1 = conv_w(ks[0], in_channels, mid_channels)
    b1 = 0.1 * jax.random.normal(ks[1], (mid_channels,), jnp.float32)
    g1 = 1.0 + 0.1 * jax.random.normal(ks[2], (mid_channels,), jnp.float32)
    beta1 = 0.1 * jax.random.normal(ks[3], (mid_channels,), jnp.float32)
    m1 = 0.1 * jax.random.normal(ks[4], (mid_channels,), jnp.float32)
    v1 = jax.random.uniform(ks[5], (mid_channels,), jnp.float32, 0.5, 1.5)

    w2 = conv_w(ks[6], mid_channels, out_channels)
    b2 = 0.1 * jax.random.normal(ks[7], (out_channels,), jnp.float32)
    g2 = 1.0 + 0.1 * jax.random.normal(ks[8], (out_channels,), jnp.float32)
    beta2 = 0.1 * jax.random.normal(ks[9], (out_channels,), jnp.float32)
    m2 = 0.1 * jax.random.normal(ks[10], (out_channels,), jnp.float32)
    v2 = jax.random.uniform(ks[11], (out_channels,), jnp.float32, 0.5, 1.5)

    s1, fb1 = fold_bn(b1, g1, beta1, m1, v1)
    s2, fb2 = fold_bn(b2, g2, beta2, m2, v2)
    return {"w1": w1, "scale1": s1, "bias1": fb1,
            "w2": w2, "scale2": s2, "bias2": fb2}


def _ref_block(x_nhwc, w_merged_bf16, scale, bias):
    # Same bf16 operand quantization as the kernel, f32 accumulation.
    _, c3, cout = w_merged_bf16.shape
    w_hwio = w_merged_bf16.reshape(3, 3, c3 // 3, cout)
    y = lax.conv_general_dilated(
        x_nhwc.astype(jnp.bfloat16), w_hwio,
        window_strides=(1, 1), padding="SAME",
        dimension_numbers=("NHWC", "HWIO", "NHWC"),
        preferred_element_type=jnp.float32)
    return jnp.maximum(y * scale.reshape(1, 1, 1, -1)
                       + bias.reshape(1, 1, 1, -1), 0.0)


def double_conv_ref_nhwc(x_nhwc, params):
    h = _ref_block(x_nhwc, params["w1"], params["scale1"], params["bias1"])
    y = _ref_block(h, params["w2"], params["scale2"], params["bias2"])
    return y.astype(jnp.bfloat16)


if __name__ == "__main__":
    configs = [
        # (N, C_in, C_out, H, W)
        (2, 4, 8, 16, 16),     # tiny toy shape
        (2, 64, 64, 16, 16),   # realistic channel count
    ]
    key = jax.random.PRNGKey(0)
    for (N, C_in, C_out, H, W) in configs:
        key, k_x, k_p = jax.random.split(key, 3)
        # NHWC, bf16 end-to-end (no NCHW<->NHWC HBM passes on the hot path).
        x = jax.random.normal(k_x, (N, H, W, C_in),
                              jnp.float32).astype(jnp.bfloat16)
        params = init_params(k_p, C_in, C_out)

        out = jax.block_until_ready(double_conv_nhwc(x, params))
        ref = jax.block_until_ready(double_conv_ref_nhwc(x, params))

        assert out.shape == (N, H, W, C_out)
        assert out.dtype == jnp.bfloat16
        o32 = out.astype(jnp.float32)
        r32 = ref.astype(jnp.float32)
        assert jnp.allclose(o32, r32, atol=2e-2, rtol=2e-2), (
            f"mismatch at config {(N, C_in, C_out, H, W)}: "
            f"max abs err {jnp.max(jnp.abs(o32 - r32))}")

    print("KERNEL_OK")
</pallas_src>

<mosaic_0001>
module attributes {stable_mosaic.version = 11 : i64} {
  func.func @double_conv_kernel(%arg0: i32, %arg1: memref<1x16x16x4xbf16, #tpu.memory_space<vmem>>, %arg2: memref<3x12x8xbf16, #tpu.memory_space<vmem>>, %arg3: memref<1x8xf32, #tpu.memory_space<vmem>>, %arg4: memref<1x8xf32, #tpu.memory_space<vmem>>, %arg5: memref<3x24x8xbf16, #tpu.memory_space<vmem>>, %arg6: memref<1x8xf32, #tpu.memory_space<vmem>>, %arg7: memref<1x8xf32, #tpu.memory_space<vmem>>, %arg8: memref<1x16x16x8xbf16, #tpu.memory_space<vmem>>, %arg9: memref<18x16x12xbf16, #tpu.memory_space<vmem>>, %arg10: memref<18x16x24xbf16, #tpu.memory_space<vmem>>) attributes {dimension_semantics = [#tpu.dimension_semantics<parallel>], iteration_bounds = array<i64: 2>, scalar_prefetch = 0 : i64, scratch_operands = 2 : i64, tpu.core_type = #tpu.core_type<tc>, window_params = [{transform_indices = @transform_0, window_bounds = array<i64: 1, 16, 16, 4>}, {pipeline_mode = #tpu.pipeline_mode<synchronous>, transform_indices = @transform_1, window_bounds = array<i64: 3, 12, 8>}, {pipeline_mode = #tpu.pipeline_mode<synchronous>, transform_indices = @transform_2, window_bounds = array<i64: 1, 8>}, {pipeline_mode = #tpu.pipeline_mode<synchronous>, transform_indices = @transform_3, window_bounds = array<i64: 1, 8>}, {pipeline_mode = #tpu.pipeline_mode<synchronous>, transform_indices = @transform_4, window_bounds = array<i64: 3, 24, 8>}, {pipeline_mode = #tpu.pipeline_mode<synchronous>, transform_indices = @transform_5, window_bounds = array<i64: 1, 8>}, {pipeline_mode = #tpu.pipeline_mode<synchronous>, transform_indices = @transform_6, window_bounds = array<i64: 1, 8>}, {transform_indices = @transform_7, window_bounds = array<i64: 1, 16, 16, 8>}]} {
    %c0 = arith.constant 0 : index
    %c0_0 = arith.constant 0 : index
    %c0_1 = arith.constant 0 : index
    %c0_2 = arith.constant 0 : index
    %0 = vector.load %arg1[%c0, %c0_0, %c0_1, %c0_2] : memref<1x16x16x4xbf16, #tpu.memory_space<vmem>>, vector<1x16x16x4xbf16>
    %1 = vector.shape_cast %0 : vector<1x16x16x4xbf16> to vector<16x16x4xbf16>
    %cst = arith.constant 0.000000e+00 : bf16
    %2 = vector.broadcast %cst : bf16 to vector<1x16x12xbf16>
    %cst_3 = arith.constant 0.000000e+00 : bf16
    %3 = vector.broadcast %cst_3 : bf16 to vector<16x1x4xbf16>
    %c0_4 = arith.constant 0 : index
    %c0_5 = arith.constant 0 : index
    %c0_6 = arith.constant 0 : index
    %4 = vector.load %arg9[%c0_4, %c0_5, %c0_6] : memref<18x16x12xbf16, #tpu.memory_space<vmem>>, vector<1x16x12xbf16>
    tpu.vector_store %arg9[%c0_4, %c0_5, %c0_6], %2 {strides = array<i32>} : memref<18x16x12xbf16, #tpu.memory_space<vmem>>, vector<1x16x12xbf16>,
    %c17 = arith.constant 17 : index
    %c0_7 = arith.constant 0 : index
    %c0_8 = arith.constant 0 : index
    %5 = vector.load %arg9[%c17, %c0_7, %c0_8] : memref<18x16x12xbf16, #tpu.memory_space<vmem>>, vector<1x16x12xbf16>
    tpu.vector_store %arg9[%c17, %c0_7, %c0_8], %2 {strides = array<i32>} : memref<18x16x12xbf16, #tpu.memory_space<vmem>>, vector<1x16x12xbf16>,
    %c1 = arith.constant 1 : index
    %c0_9 = arith.constant 0 : index
    %c0_10 = arith.constant 0 : index
    %6 = vector.load %arg9[%c1, %c0_9, %c0_10] : memref<18x16x12xbf16, #tpu.memory_space<vmem>>, vector<16x1x4xbf16>
    tpu.vector_store %arg9[%c1, %c0_9, %c0_10], %3 {strides = array<i32>} : memref<18x16x12xbf16, #tpu.memory_space<vmem>>, vector<16x1x4xbf16>,
    %c1_11 = arith.constant 1 : index
    %c15 = arith.constant 15 : index
    %c8 = arith.constant 8 : index
    %7 = vector.load %arg9[%c1_11, %c15, %c8] : memref<18x16x12xbf16, #tpu.memory_space<vmem>>, vector<16x1x4xbf16>
    tpu.vector_store %arg9[%c1_11, %c15, %c8], %3 {strides = array<i32>} : memref<18x16x12xbf16, #tpu.memory_space<vmem>>, vector<16x1x4xbf16>,
    %8 = vector.extract_strided_slice %1 {offsets = [0, 0, 0], sizes = [16, 15, 4], strides = [1, 1, 1]} : vector<16x16x4xbf16> to vector<16x15x4xbf16>
    %c1_12 = arith.constant 1 : index
    %c1_13 = arith.constant 1 : index
    %c0_14 = arith.constant 0 : index
    %9 = vector.load %arg9[%c1_12, %c1_13, %c0_14] : memref<18x16x12xbf16, #tpu.memory_space<vmem>>, vector<16x15x4xbf16>
    tpu.vector_store %arg9[%c1_12, %c1_13, %c0_14], %8 {strides = array<i32>} : memref<18x16x12xbf16, #tpu.memory_space<vmem>>, vector<16x15x4xbf16>,
    %c1_15 = arith.constant 1 : index
    %c0_16 = arith.constant 0 : index
    %c4 = arith.constant 4 : index
    %10 = vector.load %arg9[%c1_15, %c0_16, %c4] : memref<18x16x12xbf16, #tpu.memory_space<vmem>>, vector<16x16x4xbf16>
    tpu.vector_store %arg9[%c1_15, %c0_16, %c4], %1 {strides = array<i32>} : memref<18x16x12xbf16, #tpu.memory_space<vmem>>, vector<16x16x4xbf16>,
    %11 = vector.extract_strided_slice %1 {offsets = [0, 1, 0], sizes = [16, 15, 4], strides = [1, 1, 1]} : vector<16x16x4xbf16> to vector<16x15x4xbf16>
    %c1_17 = arith.constant 1 : index
    %c0_18 = arith.constant 0 : index
    %c8_19 = arith.constant 8 : index
    %12 = vector.load %arg9[%c1_17, %c0_18, %c8_19] : memref<18x16x12xbf16, #tpu.memory_space<vmem>>, vector<16x15x4xbf16>
    tpu.vector_store %arg9[%c1_17, %c0_18, %c8_19], %11 {strides = array<i32>} : memref<18x16x12xbf16, #tpu.memory_space<vmem>>, vector<16x15x4xbf16>,
    %cst_20 = arith.constant 0.000000e+00 : f32
    %13 = vector.broadcast %cst_20 : f32 to vector<256x8xf32>
    %c0_21 = arith.constant 0 : index
    %c0_22 = arith.constant 0 : index
    %c0_23 = arith.constant 0 : index
    %14 = vector.load %arg9[%c0_21, %c0_22, %c0_23] : memref<18x16x12xbf16, #tpu.memory_space<vmem>>, vector<16x16x12xbf16>
    %15 = vector.shape_cast %14 : vector<16x16x12xbf16> to vector<256x12xbf16>
    %c0_24 = arith.constant 0 : index
    %c0_25 = arith.constant 0 : index
    %c0_26 = arith.constant 0 : index
    %16 = vector.load %arg2[%c0_24, %c0_25, %c0_26] : memref<3x12x8xbf16, #tpu.memory_space<vmem>>, vector<1x12x8xbf16>
    %17 = vector.shape_cast %16 : vector<1x12x8xbf16> to vector<12x8xbf16>
    %cst_27 = arith.constant dense<0.000000e+00> : vector<256x8xf32>
    %18 = tpu.matmul %15, %17, %cst_27 {dimension_numbers = #tpu.dot_dimension_numbers<[1], [0], [0], [1], [0, 0, 1, 1], [], []>} : vector<256x12xbf16>, vector<12x8xbf16>, vector<256x8xf32> -> vector<256x8xf32>
    %19 = arith.addf %13, %18 : vector<256x8xf32>
    %c1_28 = arith.constant 1 : index
    %c0_29 = arith.constant 0 : index
    %c0_30 = arith.constant 0 : index
    %20 = vector.load %arg9[%c1_28, %c0_29, %c0_30] : memref<18x16x12xbf16, #tpu.memory_space<vmem>>, vector<16x16x12xbf16>
    %21 = vector.shape_cast %20 : vector<16x16x12xbf16> to vector<256x12xbf16>
    %c1_31 = arith.constant 1 : index
    %c0_32 = arith.constant 0 : index
    %c0_33 = arith.constant 0 : index
    %22 = vector.load %arg2[%c1_31, %c0_32, %c0_33] : memref<3x12x8xbf16, #tpu.memory_space<vmem>>, vector<1x12x8xbf16>
    %23 = vector.shape_cast %22 : vector<1x12x8xbf16> to vector<12x8xbf16>
    %cst_34 = arith.constant dense<0.000000e+00> : vector<256x8xf32>
    %24 = tpu.matmul %21, %23, %cst_34 {dimension_numbers = #tpu.dot_dimension_numbers<[1], [0], [0], [1], [0, 0, 1, 1], [], []>} : vector<256x12xbf16>, vector<12x8xbf16>, vector<256x8xf32> -> vector<256x8xf32>
    %25 = arith.addf %19, %24 : vector<256x8xf32>
    %c2 = arith.constant 2 : index
    %c0_35 = arith.constant 0 : index
    %c0_36 = arith.constant 0 : index
    %26 = vector.load %arg9[%c2, %c0_35, %c0_36] : memref<18x16x12xbf16, #tpu.memory_space<vmem>>, vector<16x16x12xbf16>
    %27 = vector.shape_cast %26 : vector<16x16x12xbf16> to vector<256x12xbf16>
    %c2_37 = arith.constant 2 : index
    %c0_38 = arith.constant 0 : index
    %c0_39 = arith.constant 0 : index
    %28 = vector.load %arg2[%c2_37, %c0_38, %c0_39] : memref<3x12x8xbf16, #tpu.memory_space<vmem>>, vector<1x12x8xbf16>
    %29 = vector.shape_cast %28 : vector<1x12x8xbf16> to vector<12x8xbf16>
    %cst_40 = arith.constant dense<0.000000e+00> : vector<256x8xf32>
    %30 = tpu.matmul %27, %29, %cst_40 {dimension_numbers = #tpu.dot_dimension_numbers<[1], [0], [0], [1], [0, 0, 1, 1], [], []>} : vector<256x12xbf16>, vector<12x8xbf16>, vector<256x8xf32> -> vector<256x8xf32>
    %31 = arith.addf %25, %30 : vector<256x8xf32>
    %c0_41 = arith.constant 0 : index
    %c0_42 = arith.constant 0 : index
    %32 = vector.load %arg3[%c0_41, %c0_42] : memref<1x8xf32, #tpu.memory_space<vmem>>, vector<1x8xf32>
    %33 = vector.broadcast %32 : vector<1x8xf32> to vector<256x8xf32>
    %34 = arith.mulf %31, %33 : vector<256x8xf32>
    %c0_43 = arith.constant 0 : index
    %c0_44 = arith.constant 0 : index
    %35 = vector.load %arg4[%c0_43, %c0_44] : memref<1x8xf32, #tpu.memory_space<vmem>>, vector<1x8xf32>
    %36 = vector.broadcast %35 : vector<1x8xf32> to vector<256x8xf32>
    %37 = arith.addf %34, %36 : vector<256x8xf32>
    %cst_45 = arith.constant 0.000000e+00 : f32
    %38 = vector.broadcast %cst_45 : f32 to vector<256x8xf32>
    %39 = arith.maximumf %37, %38 : vector<256x8xf32>
    %40 = arith.truncf %39 : vector<256x8xf32> to vector<256x8xbf16>
    %41 = vector.shape_cast %40 : vector<256x8xbf16> to vector<16x16x8xbf16>
    %cst_46 = arith.constant 0.000000e+00 : bf16
    %42 = vector.broadcast %cst_46 : bf16 to vector<1x16x24xbf16>
    %cst_47 = arith.constant 0.000000e+00 : bf16
    %43 = vector.broadcast %cst_47 : bf16 to vector<16x1x8xbf16>
    %c0_48 = arith.constant 0 : index
    %c0_49 = arith.constant 0 : index
    %c0_50 = arith.constant 0 : index
    %44 = vector.load %arg10[%c0_48, %c0_49, %c0_50] : memref<18x16x24xbf16, #tpu.memory_space<vmem>>, vector<1x16x24xbf16>
    tpu.vector_store %arg10[%c0_48, %c0_49, %c0_50], %42 {strides = array<i32>} : memref<18x16x24xbf16, #tpu.memory_space<vmem>>, vector<1x16x24xbf16>,
    %c17_51 = arith.constant 17 : index
    %c0_52 = arith.constant 0 : index
    %c0_53 = arith.constant 0 : index
    %45 = vector.load %arg10[%c17_51, %c0_52, %c0_53] : memref<18x16x24xbf16, #tpu.memory_space<vmem>>, vector<1x16x24xbf16>
    tpu.vector_store %arg10[%c17_51, %c0_52, %c0_53], %42 {strides = array<i32>} : memref<18x16x24xbf16, #tpu.memory_space<vmem>>, vector<1x16x24xbf16>,
    %c1_54 = arith.constant 1 : index
    %c0_55 = arith.constant 0 : index
    %c0_56 = arith.constant 0 : index
    %46 = vector.load %arg10[%c1_54, %c0_55, %c0_56] : memref<18x16x24xbf16, #tpu.memory_space<vmem>>, vector<16x1x8xbf16>
    tpu.vector_store %arg10[%c1_54, %c0_55, %c0_56], %43 {strides = array<i32>} : memref<18x16x24xbf16, #tpu.memory_space<vmem>>, vector<16x1x8xbf16>,
    %c1_57 = arith.constant 1 : index
    %c15_58 = arith.constant 15 : index
    %c16 = arith.constant 16 : index
    %47 = vector.load %arg10[%c1_57, %c15_58, %c16] : memref<18x16x24xbf16, #tpu.memory_space<vmem>>, vector<16x1x8xbf16>
    tpu.vector_store %arg10[%c1_57, %c15_58, %c16], %43 {strides = array<i32>} : memref<18x16x24xbf16, #tpu.memory_space<vmem>>, vector<16x1x8xbf16>,
    %48 = vector.extract_strided_slice %41 {offsets = [0, 0, 0], sizes = [16, 15, 8], strides = [1, 1, 1]} : vector<16x16x8xbf16> to vector<16x15x8xbf16>
    %c1_59 = arith.constant 1 : index
    %c1_60 = arith.constant 1 : index
    %c0_61 = arith.constant 0 : index
    %49 = vector.load %arg10[%c1_59, %c1_60, %c0_61] : memref<18x16x24xbf16, #tpu.memory_space<vmem>>, vector<16x15x8xbf16>
    tpu.vector_store %arg10[%c1_59, %c1_60, %c0_61], %48 {strides = array<i32>} : memref<18x16x24xbf16, #tpu.memory_space<vmem>>, vector<16x15x8xbf16>,
    %c1_62 = arith.constant 1 : index
    %c0_63 = arith.constant 0 : index
    %c8_64 = arith.constant 8 : index
    %50 = vector.load %arg10[%c1_62, %c0_63, %c8_64] : memref<18x16x24xbf16, #tpu.memory_space<vmem>>, vector<16x16x8xbf16>
    tpu.vector_store %arg10[%c1_62, %c0_63, %c8_64], %41 {strides = array<i32>} : memref<18x16x24xbf16, #tpu.memory_space<vmem>>, vector<16x16x8xbf16>,
    %51 = vector.extract_strided_slice %41 {offsets = [0, 1, 0], sizes = [16, 15, 8], strides = [1, 1, 1]} : vector<16x16x8xbf16> to vector<16x15x8xbf16>
    %c1_65 = arith.constant 1 : index
    %c0_66 = arith.constant 0 : index
    %c16_67 = arith.constant 16 : index
    %52 = vector.load %arg10[%c1_65, %c0_66, %c16_67] : memref<18x16x24xbf16, #tpu.memory_space<vmem>>, vector<16x15x8xbf16>
    tpu.vector_store %arg10[%c1_65, %c0_66, %c16_67], %51 {strides = array<i32>} : memref<18x16x24xbf16, #tpu.memory_space<vmem>>, vector<16x15x8xbf16>,
    %cst_68 = arith.constant 0.000000e+00 : f32
    %53 = vector.broadcast %cst_68 : f32 to vector<256x8xf32>
    %c0_69 = arith.constant 0 : index
    %c0_70 = arith.constant 0 : index
    %c0_71 = arith.constant 0 : index
    %54 = vector.load %arg10[%c0_69, %c0_70, %c0_71] : memref<18x16x24xbf16, #tpu.memory_space<vmem>>, vector<16x16x24xbf16>
    %55 = vector.shape_cast %54 : vector<16x16x24xbf16> to vector<256x24xbf16>
    %c0_72 = arith.constant 0 : index
    %c0_73 = arith.constant 0 : index
    %c0_74 = arith.constant 0 : index
    %56 = vector.load %arg5[%c0_72, %c0_73, %c0_74] : memref<3x24x8xbf16, #tpu.memory_space<vmem>>, vector<1x24x8xbf16>
    %57 = vector.shape_cast %56 : vector<1x24x8xbf16> to vector<24x8xbf16>
    %cst_75 = arith.constant dense<0.000000e+00> : vector<256x8xf32>
    %58 = tpu.matmul %55, %57, %cst_75 {dimension_numbers = #tpu.dot_dimension_numbers<[1], [0], [0], [1], [0, 0, 1, 1], [], []>} : vector<256x24xbf16>, vector<24x8xbf16>, vector<256x8xf32> -> vector<256x8xf32>
    %59 = arith.addf %53, %58 : vector<256x8xf32>
    %c1_76 = arith.constant 1 : index
    %c0_77 = arith.constant 0 : index
    %c0_78 = arith.constant 0 : index
    %60 = vector.load %arg10[%c1_76, %c0_77, %c0_78] : memref<18x16x24xbf16, #tpu.memory_space<vmem>>, vector<16x16x24xbf16>
    %61 = vector.shape_cast %60 : vector<16x16x24xbf16> to vector<256x24xbf16>
    %c1_79 = arith.constant 1 : index
    %c0_80 = arith.constant 0 : index
    %c0_81 = arith.constant 0 : index
    %62 = vector.load %arg5[%c1_79, %c0_80, %c0_81] : memref<3x24x8xbf16, #tpu.memory_space<vmem>>, vector<1x24x8xbf16>
    %63 = vector.shape_cast %62 : vector<1x24x8xbf16> to vector<24x8xbf16>
    %cst_82 = arith.constant dense<0.000000e+00> : vector<256x8xf32>
    %64 = tpu.matmul %61, %63, %cst_82 {dimension_numbers = #tpu.dot_dimension_numbers<[1], [0], [0], [1], [0, 0, 1, 1], [], []>} : vector<256x24xbf16>, vector<24x8xbf16>, vector<256x8xf32> -> vector<256x8xf32>
    %65 = arith.addf %59, %64 : vector<256x8xf32>
    %c2_83 = arith.constant 2 : index
    %c0_84 = arith.constant 0 : index
    %c0_85 = arith.constant 0 : index
    %66 = vector.load %arg10[%c2_83, %c0_84, %c0_85] : memref<18x16x24xbf16, #tpu.memory_space<vmem>>, vector<16x16x24xbf16>
    %67 = vector.shape_cast %66 : vector<16x16x24xbf16> to vector<256x24xbf16>
    %c2_86 = arith.constant 2 : index
    %c0_87 = arith.constant 0 : index
    %c0_88 = arith.constant 0 : index
    %68 = vector.load %arg5[%c2_86, %c0_87, %c0_88] : memref<3x24x8xbf16, #tpu.memory_space<vmem>>, vector<1x24x8xbf16>
    %69 = vector.shape_cast %68 : vector<1x24x8xbf16> to vector<24x8xbf16>
    %cst_89 = arith.constant dense<0.000000e+00> : vector<256x8xf32>
    %70 = tpu.matmul %67, %69, %cst_89 {dimension_numbers = #tpu.dot_dimension_numbers<[1], [0], [0], [1], [0, 0, 1, 1], [], []>} : vector<256x24xbf16>, vector<24x8xbf16>, vector<256x8xf32> -> vector<256x8xf32>
    %71 = arith.addf %65, %70 : vector<256x8xf32>
    %c0_90 = arith.constant 0 : index
    %c0_91 = arith.constant 0 : index
    %72 = vector.load %arg6[%c0_90, %c0_91] : memref<1x8xf32, #tpu.memory_space<vmem>>, vector<1x8xf32>
    %73 = vector.broadcast %72 : vector<1x8xf32> to vector<256x8xf32>
    %74 = arith.mulf %71, %73 : vector<256x8xf32>
    %c0_92 = arith.constant 0 : index
    %c0_93 = arith.constant 0 : index
    %75 = vector.load %arg7[%c0_92, %c0_93] : memref<1x8xf32, #tpu.memory_space<vmem>>, vector<1x8xf32>
    %76 = vector.broadcast %75 : vector<1x8xf32> to vector<256x8xf32>
    %77 = arith.addf %74, %76 : vector<256x8xf32>
    %cst_94 = arith.constant 0.000000e+00 : f32
    %78 = vector.broadcast %cst_94 : f32 to vector<256x8xf32>
    %79 = arith.maximumf %77, %78 : vector<256x8xf32>
    %80 = arith.truncf %79 : vector<256x8xf32> to vector<256x8xbf16>
    %81 = vector.shape_cast %80 : vector<256x8xbf16> to vector<1x16x16x8xbf16>
    %c0_95 = arith.constant 0 : index
    %c0_96 = arith.constant 0 : index
    %c0_97 = arith.constant 0 : index
    %c0_98 = arith.constant 0 : index
    %82 = vector.load %arg8[%c0_95, %c0_96, %c0_97, %c0_98] : memref<1x16x16x8xbf16, #tpu.memory_space<vmem>>, vector<1x16x16x8xbf16>
    tpu.vector_store %arg8[%c0_95, %c0_96, %c0_97, %c0_98], %81 {strides = array<i32>} : memref<1x16x16x8xbf16, #tpu.memory_space<vmem>>, vector<1x16x16x8xbf16>,
    return
  }
  func.func @transform_0(%arg0: i32) -> (i32, i32, i32, i32) {
    %c0_i32 = arith.constant 0 : i32
    %c0_i32_0 = arith.constant 0 : i32
    %c0_i32_1 = arith.constant 0 : i32
    %c0_i32_2 = arith.constant 0 : i32
    return %arg0, %c0_i32, %c0_i32_0, %c0_i32_1 : i32, i32, i32, i32
  }
  func.func @transform_1(%arg0: i32) -> (i32, i32, i32) {
    %c0_i32 = arith.constant 0 : i32
    %c0_i32_0 = arith.constant 0 : i32
    %c0_i32_1 = arith.constant 0 : i32
    %c0_i32_2 = arith.constant 0 : i32
    return %c0_i32, %c0_i32_0, %c0_i32_1 : i32, i32, i32
  }
  func.func @transform_2(%arg0: i32) -> (i32, i32) {
    %c0_i32 = arith.constant 0 : i32
    %c0_i32_0 = arith.constant 0 : i32
    %c0_i32_1 = arith.constant 0 : i32
    return %c0_i32, %c0_i32_0 : i32, i32
  }
  func.func @transform_3(%arg0: i32) -> (i32, i32) {
    %c0_i32 = arith.constant 0 : i32
    %c0_i32_0 = arith.constant 0 : i32
    %c0_i32_1 = arith.constant 0 : i32
    return %c0_i32, %c0_i32_0 : i32, i32
  }
  func.func @transform_4(%arg0: i32) -> (i32, i32, i32) {
    %c0_i32 = arith.constant 0 : i32
    %c0_i32_0 = arith.constant 0 : i32
    %c0_i32_1 = arith.constant 0 : i32
    %c0_i32_2 = arith.constant 0 : i32
    return %c0_i32, %c0_i32_0, %c0_i32_1 : i32, i32, i32
  }
  func.func @transform_5(%arg0: i32) -> (i32, i32) {
    %c0_i32 = arith.constant 0 : i32
    %c0_i32_0 = arith.constant 0 : i32
    %c0_i32_1 = arith.constant 0 : i32
    return %c0_i32, %c0_i32_0 : i32, i32
  }
  func.func @transform_6(%arg0: i32) -> (i32, i32) {
    %c0_i32 = arith.constant 0 : i32
    %c0_i32_0 = arith.constant 0 : i32
    %c0_i32_1 = arith.constant 0 : i32
    return %c0_i32, %c0_i32_0 : i32, i32
  }
  func.func @transform_7(%arg0: i32) -> (i32, i32, i32, i32) {
    %c0_i32 = arith.constant 0 : i32
    %c0_i32_0 = arith.constant 0 : i32
    %c0_i32_1 = arith.constant 0 : i32
    %c0_i32_2 = arith.constant 0 : i32
    return %arg0, %c0_i32, %c0_i32_0, %c0_i32_1 : i32, i32, i32, i32
  }
}

</mosaic_0001>

<bundles_post_ra>
// kernel: tpu_custom_call.1
= control target key start
LH: loop header
LB: loop body
LE: loop exit
PB: predicated region body
PF: predicated region fallthrough
CT: control target
= control target key end

     0   :  { %s4067_s24 = smov 0   ;;  %s5208_s0 = inlined_call_operand.vmem [shape: bf16[2,16,16,4], index: 0, kind: input, shape index: {}]   ;;  %s5209_s1 = inlined_call_operand.vmem [shape: bf16[3,12,8], index: 1, kind: input, shape index: {}]   ;;  %s5210_s2 = inlined_call_operand.vmem [shape: f32[1,8], index: 2, kind: input, shape index: {}]   ;;  %s5211_s3 = inlined_call_operand.vmem [shape: f32[1,8], index: 3, kind: input, shape index: {}]   ;;  %s5212_s4 = inlined_call_operand.vmem [shape: bf16[3,24,8], index: 4, kind: input, shape index: {}]   ;;  %s5213_s5 = inlined_call_operand.vmem [shape: f32[1,8], index: 5, kind: input, shape index: {}]   ;;  %s5214_s6 = inlined_call_operand.vmem [shape: f32[1,8], index: 6, kind: input, shape index: {}]   ;;  %s5215_s7 = inlined_call_operand.vmem [shape: bf16[2,16,16,8], index: 7, kind: output, shape index: {}]  }
   0x1 LB: > { %s3317_s25 = sadd.s32 4294967295, %s4021_s24   ;;  %p3321_p0 = scmp.ge.s32.totalorder %s4021_s24, 1  ;;  %s4021_s24 = sphi %s4067_s24, %s17_s24  }
   0x2   : > { %p237_p1 = scmp.lt.s32.totalorder %s4021_s24, 3 }
   0x4   : > { %p238_p2 = pnand %p3321_p0, %p237_p1 }
   0x5   : > { %p269_p3 = scmp.lt.s32.totalorder (!%p238_p2), %s3317_s25, 1  ;;  %vm317_vm0 = vcmask (!%p238_p2), 24576   ;;  %vm318_vm1 = vsmask.f32 (!%p238_p2), 256  ;;  %vm368_vm2 = vcmask (!%p238_p2), 97351   ;;  %s4023_s30 = smov (!%p238_p2), 4  }
   0x6   : > { %241 = sbr.rel (%p238_p2) target bundleno = 1032 (0x408), region = 48  ;;  %vm4076_vm3 = vmand (!%p238_p2), %vm317_vm0, %vm318_vm1  ;;  %v320_v1 = vld [vmem:[#allocation2 + $0x8] sm:$0x1] (!%p238_p2)  ;;  %vm369_vm4 = vsmask.f32 (!%p238_p2), 7966  ;;  %s4024_s8 = smov (!%p238_p2), 8  }
   0x7   : > { %v321_v2 = vsel (!%p238_p2), %vm4076_vm3, 0, %v320_v1  ;;  %vm4085_vm5 = vmand (!%p238_p2), %vm368_vm2, %vm369_vm4  ;;  %v371_v4 = vld [vmem:[#allocation2 + $0x8] sm:$0x80] (!%p238_p2)  ;;  %v326_v6 = vld [vmem:[#allocation2 + $0x18] sm:$0x1] (!%p238_p2)  ;;  %vm627_vm6 = vcmask (!%p238_p2), 31744  }
   0x8   : > { %322 = vst [vmem:[#allocation2 + $0x8] sm:$0x1] (!%p238_p2), %v321_v2  ;;  %v372_v5 = vsel (!%p238_p2), %vm4085_vm5, 0, %v371_v4  ;;  %v377_v7 = vld [vmem:[#allocation2 + $0x18] sm:$0x80] (!%p238_p2)  ;;  %v327_v8 = vsel (!%p238_p2), %vm4076_vm3, 0, %v326_v6 }
   0x9   : > { %373 = vst [vmem:[#allocation2 + $0x8] sm:$0x80] (!%p238_p2), %v372_v5  ;;  %v378_v9 = vsel (!%p238_p2), %vm4085_vm5, 0, %v377_v7  ;;  %v323_v10 = vld [vmem:[#allocation2 + $0x10] sm:$0x1] (!%p238_p2)  ;;  %vm964_vm8 = vcmask (!%p238_p2), 1045504  }
   0xa   : > { %328 = vst [vmem:[#allocation2 + $0x18] sm:$0x1] (!%p238_p2), %v327_v8  ;;  %379 = vst [vmem:[#allocation2 + $0x18] sm:$0x80] (!%p238_p2), %v378_v9  ;;  %v324_v11 = vsel (!%p238_p2), %vm4076_vm3, 0, %v323_v10  ;;  %vm312_vm10 = vcmask (!%p238_p2), 97280  }
   0xb   : > { %v374_v12 = vld [vmem:[#allocation2 + $0x10] sm:$0x80] (!%p238_p2)  ;;  %325 = vst [vmem:[#allocation2 + $0x10] sm:$0x1] (!%p238_p2), %v324_v11  ;;  %vm628_vm7 = vsmask.f32 (!%p238_p2), 7938 }
   0xc   : > { %v375_v14 = vsel (!%p238_p2), %vm4085_vm5, 0, %v374_v12  ;;  %vm4226_vm9 = vmand (!%p238_p2), %vm627_vm6, %vm628_vm7  ;;  %vm726_vm11 = vcmask (!%p238_p2), 64544   ;;  %vm823_vm12 = vcmask (!%p238_p2), 97344   ;;  %vm824_vm13 = vsmask.f32 (!%p238_p2), 7424  ;;  %s4026_s23 = smov (!%p238_p2), 16  }
   0xd   : > { %s5233_s25 = smov (!%p269_p3, %s3317_s25), 1  ;;  %376 = vst [vmem:[#allocation2 + $0x10] sm:$0x80] %v375_v14  ;;  %vm4473_vm14 = vmand %vm823_vm12, %vm824_vm13  ;;  %vm1746_vm15 = vcmask 57344   ;;  %vm1796_vm0 = vcmask 195719  }
   0xe   : > { %s3495_s26 = sshll.u32 %s5233_s25, 7  ;;  %vm4641_vm2 = vmand %vm1746_vm15, %vm318_vm1  ;;  %vm2331_vm1 = vcmask 1043456  }
   0xf   : > { %s4101_s29 = scalar_lea.vmem %s5208_s0, %s3495_s26  ;;  %s5082_s18 = scalar_lea.vmem %s5215_s7, %s3495_s26 }
  0x10   : > { %v4106_v13 = vld [vmem:[%s4101_s29] sm:$0xff]   ;;  %v4111_v15 = vld [vmem:[%s4101_s29 + $0x10] sm:$0xff]   ;;  %v3992_v16 = vld [vmem:[%s4101_s29 + $0x8] sm:$0xff]  }
  0x11   : > { %678 = vrot.lane.b32.xlu0 %v4106_v13, %s4023_s30  ;;  %682 = vrot.lane.b32.xlu1 %v4111_v15, %s4023_s30  ;;  %v500_v17 = vshrl.u32 %v4106_v13, 16  ;;  %v503_v18 = vshll.u32 %v4106_v13, 16  ;;  %v510_v19 = vshll.u32 %v3992_v16, 16  ;;  %v507_v21 = vshrl.u32 %v3992_v16, 16  ;;  %v4123_v24 = vld [vmem:[%s4101_s29 + $0x18] sm:$0xff]   ;;  %v4131_v30 = vld [vmem:[%s4101_s29 + $0x20] sm:$0xff]  }
  0x12   : > { %v517_v22 = vshll.u32 %v4111_v15, 16  ;;  %v514_v27 = vshrl.u32 %v4111_v15, 16  ;;  %v524_v29 = vshll.u32 %v4123_v24, 16  ;;  %v4134_v33 = vld [vmem:[%s4101_s29 + $0x28] sm:$0xff]   ;;  %v521_v35 = vshrl.u32 %v4123_v24, 16  ;;  %v4141_v37 = vld [vmem:[%s4101_s29 + $0x30] sm:$0xff]  }
  0x13   : > { %v743_v20 = vrot.slane %v503_v18, 1  ;;  %v745_v23 = vrot.slane %v510_v19, 1  ;;  %v502_v31 = vrot.slane %v500_v17, 7  ;;  %v509_v32 = vrot.slane %v507_v21, 7  ;;  %v4151_v43 = vld [vmem:[%s4101_s29 + $0x38] sm:$0xff]   ;;  %v4154_v44 = vld [vmem:[%s4101_s29 + $0x40] sm:$0xff]  }
  0x14   : > { %v747_v28 = vrot.slane %v517_v22, 1  ;;  %v749_v36 = vrot.slane %v524_v29, 1  ;;  %v531_v38 = vshll.u32 %v4131_v30, 16  ;;  %v528_v39 = vshrl.u32 %v4131_v30, 16  ;;  %v4161_v48 = vld [vmem:[%s4101_s29 + $0x48] sm:$0xff]   ;;  %v4175_v55 = vld [vmem:[%s4101_s29 + $0x50] sm:$0xff]  }
  0x15   : > { %680 = vrot.lane.b32.xlu0 %v3992_v16, %s4023_s30  ;;  %v744_v25 = vor.u32 %v743_v20, %v500_v17  ;;  %v746_v26 = vor.u32 %v745_v23, %v507_v21  ;;  %v538_v40 = vshll.u32 %v4134_v33, 16  ;;  %v516_v41 = vrot.slane %v514_v27, 7  ;;  %v4190_v5 = vld [vmem:[%s4101_s29 + $0x58] sm:$0xff]   ;;  %v4194_v7 = vld [vmem:[%s4101_s29 + $0x60] sm:$0xff]   ;;  %v630_v17 = vld [vmem:[#allocation2 + $0x8] sm:$0xff] }
  0x16   : > { %v748_v34 = vor.u32 %v747_v28, %v514_v27  ;;  %v4148_v42 = vrot.slane %v521_v35, 7  ;;  %v4156_v45 = vrot.slane %v528_v39, 7  ;;  %v535_v46 = vshrl.u32 %v4134_v33, 16  ;;  %v633_v23 = vld [vmem:[#allocation2 + $0x10] sm:$0xff]  ;;  %v380_v27 = vld [vmem:[#allocation2 + $0x20] sm:$0x80] }
  0x17   : > { %775 = vrot.lane.b32.xlu1 %v744_v25, %s4024_s8  ;;  %v542_v47 = vshrl.u32 %v4141_v37, 16  ;;  %v750_v49 = vor.u32 %v749_v36, %v521_v35  ;;  %v751_v50 = vrot.slane %v531_v38, 1  ;;  %v545_v51 = vshll.u32 %v4141_v37, 16  ;;  %v332_v28 = vld [vmem:[#allocation2 + $0x28] sm:$0x1] }
  0x18   : > { %v4169_v52 = vrot.slane %v535_v46, 7  ;;  %v753_v53 = vrot.slane %v538_v40, 1  ;;  %v552_v54 = vshll.u32 %v4151_v43, 16  ;;  %v549_v57 = vshrl.u32 %v4151_v43, 16 }
  0x19   : > { %684 = vrot.lane.b32.xlu0 %v4123_v24, %s4023_s30  ;;  %v4179_v56 = vrot.slane %v542_v47, 7  ;;  %v559_v58 = vshll.u32 %v4154_v44, 16  ;;  %v566_v59 = vshll.u32 %v4161_v48, 16  ;;  %v505_v60 = vor.u32 %v503_v18, %v502_v31 }
  0x1a   : > { %v512_v61 = vor.u32 %v510_v19, %v509_v32  ;;  %v556_v62 = vshrl.u32 %v4154_v44, 16  ;;  %v573_v63 = vshll.u32 %v4175_v55, 16  ;;  %v519_v1 = vor.u32 %v517_v22, %v516_v41  ;;  %v636_v22 = vld [vmem:[#allocation2 + $0x18] sm:$0xff]  ;;  %v383_v32 = vld [vmem:[#allocation2 + $0x28] sm:$0x80] }
  0x1b   : > { %777 = vrot.lane.b32.xlu1 %v746_v26, %s4024_s8  ;;  %v752_v2 = vor.u32 %v751_v50, %v528_v39  ;;  %v755_v4 = vrot.slane %v545_v51, 1  ;;  %v563_v6 = vshrl.u32 %v4161_v48, 16  ;;  %v4200_v8 = vrot.slane %v549_v57, 7  ;;  %v329_v26 = vld [vmem:[#allocation2 + $0x20] sm:$0x1] }
  0x1c   : > { %v4204_v9 = vrot.slane %v552_v54, 1  ;;  %v4208_v10 = vrot.slane %v556_v62, 7  ;;  %v570_v11 = vshrl.u32 %v4175_v55, 16  ;;  %v4213_v12 = vrot.slane %v559_v58, 1  ;;  %v4006_v39 = vld [vmem:[%s5209_s1 + $0x8] sm:$0x3f]  }
  0x1d   : > { %686 = vrot.lane.b32.xlu0 %v4131_v30, %s4023_s30  ;;  %v4217_v13 = vrot.slane %v563_v6, 7  ;;  %v4221_v14 = vrot.slane %v566_v59, 1  ;;  %v580_v15 = vshll.u32 %v4190_v5, 16  ;;  %v4236_v19 = vrot.slane %v573_v63, 1  ;;  %v335_v41 = vld [vmem:[#allocation2 + $0x30] sm:$0x1]  ;;  %3972 = vmatprep.subr.msk.bf16.mxu0 %vm964_vm8, %v4006_v39 }
  0x1e   : > { %v4232_v18 = vrot.slane %v570_v11, 7  ;;  %v577_v20 = vshrl.u32 %v4190_v5, 16  ;;  %v584_v21 = vshrl.u32 %v4194_v7, 16  ;;  %v754_v25 = vor.u32 %v753_v53, %v535_v46  ;;  %v4259_v46 = vld [vmem:[%s4101_s29 + $0x68] sm:$0xff]  }
  0x1f   : > { %779 = vrot.lane.b32.xlu1 %v748_v34, %s4024_s8  ;;  %v631_v31 = vsel %vm4226_vm9, %v505_v60, %v630_v17  ;;  %v4251_v35 = vrot.slane %v580_v15, 1  ;;  %v637_v36 = vsel %vm4226_vm9, %v519_v1, %v636_v22  ;;  %v330_v50 = vsel %vm4076_vm3, 0, %v329_v26  ;;  %v386_v1 = vld [vmem:[#allocation2 + $0x30] sm:$0x80]  ;;  %v4285_v22 = vld [vmem:[%s5209_s1] sm:$0x3f]  }
  0x20   : > { %v4247_v34 = vrot.slane %v577_v20, 7  ;;  %632 = vst [vmem:[#allocation2 + $0x8] sm:$0xff] %v631_v31  ;;  %638 = vst [vmem:[#allocation2 + $0x18] sm:$0xff] %v637_v36  ;;  %v381_v53 = vsel %vm4085_vm5, 0, %v380_v27  ;;  %v333_v60 = vsel %vm4076_vm3, 0, %v332_v28  ;;  %v966_v17 = vsel %vm964_vm8, %v4006_v39, 0 }
  0x21   : > { %688 = vrot.lane.b32.xlu0 %v4134_v33, %s4023_s30  ;;  %331 = vst [vmem:[#allocation2 + $0x20] sm:$0x1] %v330_v50  ;;  %382 = vst [vmem:[#allocation2 + $0x20] sm:$0x80] %v381_v53  ;;  %3635 = vmatpush3.bf16.msra.mxu0 %v966_v17  ;;  %v389_v27 = vld [vmem:[#allocation2 + $0x38] sm:$0x80]  ;;  %v526_v50 = vor.u32 %v524_v29, %v4148_v42  ;;  %v758_v53 = vor.u32 %v4204_v9, %v549_v57 }
  0x22   : > { %334 = vst [vmem:[#allocation2 + $0x28] sm:$0x1] %v333_v60  ;;  %v341_v28 = vld [vmem:[#allocation2 + $0x40] sm:$0x1]  ;;  %v4291_v31 = vld [vmem:[%s4101_s29 + $0x70] sm:$0xff]   ;;  %v591_v36 = vshrl.u32 %v4259_v46, 16  ;;  %3973 = vmatprep.subr.msk.bf16.mxu0 %vm964_vm8, %v4285_v22  ;;  %v533_v24 = vor.u32 %v531_v38, %v4156_v45  ;;  %v764_v3 = vor.u32 %v4236_v19, %v570_v11 }
  0x23   : > { %781 = vrot.lane.b32.xlu1 %v750_v49, %s4024_s8  ;;  %v634_v49 = vsel %vm4226_vm9, %v512_v61, %v633_v23  ;;  %v384_v61 = vsel %vm4085_vm5, 0, %v383_v32  ;;  %v338_v23 = vld [vmem:[#allocation2 + $0x38] sm:$0x1]  ;;  %v4295_v32 = vrot.slane %v584_v21, 7  ;;  %v390_v39 = vsel %vm4085_vm5, 0, %v389_v27 }
  0x24   : > { %635 = vst [vmem:[#allocation2 + $0x10] sm:$0xff] %v634_v49  ;;  %385 = vst [vmem:[#allocation2 + $0x28] sm:$0x80] %v384_v61  ;;  %v339_v26 = vsel %vm4076_vm3, 0, %v338_v23  ;;  %v392_v49 = vld [vmem:[#allocation2 + $0x40] sm:$0x80]  ;;  %v554_v27 = vor.u32 %v552_v54, %v4200_v8 }
  0x25   : > { %690 = vrot.lane.b32.xlu0 %v4141_v37, %s4023_s30  ;;  %340 = vst [vmem:[#allocation2 + $0x38] sm:$0x1] %v339_v26  ;;  %v594_v60 = vshll.u32 %v4259_v46, 16  ;;  %391 = vst [vmem:[#allocation2 + $0x38] sm:$0x80] %v390_v39  ;;  %v598_v23 = vshrl.u32 %v4291_v31, 16  ;;  %v760_v37 = vor.u32 %v4213_v12, %v556_v62 }
  0x26   : > { %v344_v61 = vld [vmem:[#allocation2 + $0x48] sm:$0x1]  ;;  %v395_v17 = vld [vmem:[#allocation2 + $0x48] sm:$0x80]  ;;  %v347_v57 = vld [vmem:[#allocation2 + $0x50] sm:$0x1] }
  0x27   : > { %783 = vrot.lane.b32.xlu1 %v752_v2, %s4024_s8  ;;  %v756_v2 = vor.u32 %v755_v4, %v542_v47  ;;  %v336_v47 = vsel %vm4076_vm3, 0, %v335_v41  ;;  %v387_v4 = vsel %vm4085_vm5, 0, %v386_v1  ;;  %v342_v41 = vsel %vm4076_vm3, 0, %v341_v28  ;;  %v398_v9 = vld [vmem:[#allocation2 + $0x50] sm:$0x80] }
  0x28   : > { %337 = vst [vmem:[#allocation2 + $0x30] sm:$0x1] %v336_v47  ;;  %388 = vst [vmem:[#allocation2 + $0x30] sm:$0x80] %v387_v4  ;;  %v393_v1 = vsel %vm4085_vm5, 0, %v392_v49  ;;  %v345_v29 = vsel %vm4076_vm3, 0, %v344_v61  ;;  %v547_v4 = vor.u32 %v545_v51, %v4179_v56 }
  0x29   : > { %692 = vrot.lane.b32.xlu0 %v4151_v43, %s4023_s30  ;;  %343 = vst [vmem:[#allocation2 + $0x40] sm:$0x1] %v342_v41  ;;  %394 = vst [vmem:[#allocation2 + $0x40] sm:$0x80] %v393_v1  ;;  %v396_v42 = vsel %vm4085_vm5, 0, %v395_v17  ;;  %v348_v30 = vsel %vm4076_vm3, 0, %v347_v57 }
  0x2a   : > { %346 = vst [vmem:[#allocation2 + $0x48] sm:$0x1] %v345_v29  ;;  %397 = vst [vmem:[#allocation2 + $0x48] sm:$0x80] %v396_v42  ;;  %v399_v38 = vsel %vm4085_vm5, 0, %v398_v9  ;;  %v639_v26 = vld [vmem:[#allocation2 + $0x20] sm:$0xff]  ;;  %v568_v42 = vor.u32 %v566_v59, %v4217_v13  ;;  %v575_v59 = vor.u32 %v573_v63, %v4232_v18 }
  0x2b   : > { %785 = vrot.lane.b32.xlu1 %v754_v25, %s4024_s8  ;;  %v587_v25 = vshll.u32 %v4194_v7, 16  ;;  %v350_v45 = vld [vmem:[#allocation2 + $0x58] sm:$0x1]  ;;  %v401_v47 = vld [vmem:[#allocation2 + $0x58] sm:$0x80]  ;;  %v640_v51 = vsel %vm4226_vm9, %v526_v50, %v639_v26  ;;  %v642_v56 = vld [vmem:[#allocation2 + $0x28] sm:$0xff]  ;;  %v582_v26 = vor.u32 %v580_v15, %v4247_v34 }
  0x2c   : > { %349 = vst [vmem:[#allocation2 + $0x50] sm:$0x1] %v348_v30  ;;  %400 = vst [vmem:[#allocation2 + $0x50] sm:$0x80] %v399_v38  ;;  %v351_v33 = vsel %vm4076_vm3, 0, %v350_v45  ;;  %v4352_v43 = vld [vmem:[%s4101_s29 + $0x78] sm:$0xff]   ;;  %v643_v62 = vsel %vm4226_vm9, %v533_v24, %v642_v56 }
  0x2d   : > { %694 = vrot.lane.b32.xlu0 %v4154_v44, %s4023_s30  ;;  %352 = vst [vmem:[#allocation2 + $0x58] sm:$0x1] %v351_v33  ;;  %v404_v39 = vld [vmem:[#allocation2 + $0x60] sm:$0x80]  ;;  %v356_v41 = vld [vmem:[#allocation2 + $0x68] sm:$0x1]  ;;  %v589_v0 = vor.u32 %v587_v25, %v4295_v32 }
  0x2e   : > { %v601_v54 = vshll.u32 %v4291_v31, 16  ;;  %641 = vst [vmem:[#allocation2 + $0x20] sm:$0xff] %v640_v51  ;;  %v405_v12 = vsel %vm4085_vm5, 0, %v404_v39  ;;  %v357_v49 = vsel %vm4076_vm3, 0, %v356_v41  ;;  %v407_v50 = vld [vmem:[#allocation2 + $0x68] sm:$0x80] }
  0x2f   : > { %787 = vrot.lane.b32.xlu1 %v756_v2, %s4024_s8  ;;  %v540_v2 = vor.u32 %v538_v40, %v4169_v52  ;;  %v402_v40 = vsel %vm4085_vm5, 0, %v401_v47  ;;  %v353_v52 = vld [vmem:[#allocation2 + $0x60] sm:$0x1]  ;;  %v645_v8 = vld [vmem:[#allocation2 + $0x30] sm:$0xff]  ;;  %v593_v1 = vrot.slane %v591_v36, 7  ;;  %644 = vst [vmem:[#allocation2 + $0x28] sm:$0xff] %v643_v62  ;;  %v766_v62 = vor.u32 %v4251_v35, %v577_v20 }
  0x30   : > { %403 = vst [vmem:[#allocation2 + $0x58] sm:$0x80] %v402_v40  ;;  %v354_v28 = vsel %vm4076_vm3, 0, %v353_v52  ;;  %406 = vst [vmem:[#allocation2 + $0x60] sm:$0x80] %v405_v12  ;;  %v408_v17 = vsel %vm4085_vm5, 0, %v407_v50 }
  0x31   : > { %696 = vrot.lane.b32.xlu0 %v4161_v48, %s4023_s30  ;;  %355 = vst [vmem:[#allocation2 + $0x60] sm:$0x1] %v354_v28  ;;  %v646_v61 = vsel %vm4226_vm9, %v540_v2, %v645_v8  ;;  %358 = vst [vmem:[#allocation2 + $0x68] sm:$0x1] %v357_v49  ;;  %v359_v24 = vld [vmem:[#allocation2 + $0x70] sm:$0x1]  ;;  %v762_v2 = vor.u32 %v4221_v14, %v563_v6 }
  0x32   : > { %v410_v29 = vld [vmem:[#allocation2 + $0x70] sm:$0x80]  ;;  %v600_v44 = vrot.slane %v598_v23, 7  ;;  %647 = vst [vmem:[#allocation2 + $0x30] sm:$0xff] %v646_v61  ;;  %409 = vst [vmem:[#allocation2 + $0x68] sm:$0x80] %v408_v17 }
  0x33   : > { %789 = vrot.lane.b32.xlu1 %v758_v53, %s4024_s8  ;;  %v561_v53 = vor.u32 %v559_v58, %v4208_v10  ;;  %v648_v58 = vld [vmem:[#allocation2 + $0x38] sm:$0xff]  ;;  %v360_v10 = vsel %vm4076_vm3, 0, %v359_v24  ;;  %v411_v57 = vsel %vm4085_vm5, 0, %v410_v29  ;;  %v651_v30 = vld [vmem:[#allocation2 + $0x40] sm:$0xff]  ;;  %v605_v48 = vshrl.u32 %v4352_v43, 16  ;;  %v654_v6 = vld [vmem:[#allocation2 + $0x48] sm:$0xff] }
  0x34   : > { %v362_v9 = vld [vmem:[#allocation2 + $0x78] sm:$0x1]  ;;  %v649_v13 = vsel %vm4226_vm9, %v547_v4, %v648_v58  ;;  %361 = vst [vmem:[#allocation2 + $0x70] sm:$0x1] %v360_v10  ;;  %412 = vst [vmem:[#allocation2 + $0x70] sm:$0x80] %v411_v57  ;;  %v652_v63 = vsel %vm4226_vm9, %v554_v27, %v651_v30  ;;  %v603_v28 = vor.u32 %v601_v54, %v600_v44 }
  0x35   : > { %698 = vrot.lane.b32.xlu0 %v4175_v55, %s4023_s30  ;;  %v363_v38 = vsel %vm4076_vm3, 0, %v362_v9  ;;  %v413_v45 = vld [vmem:[#allocation2 + $0x78] sm:$0x80]  ;;  %v365_v47 = vld [vmem:[#allocation2 + $0x80] sm:$0x1]  ;;  %650 = vst [vmem:[#allocation2 + $0x38] sm:$0xff] %v649_v13  ;;  %v655_v33 = vsel %vm4226_vm9, %v561_v53, %v654_v6 }
  0x36   : > { %364 = vst [vmem:[#allocation2 + $0x78] sm:$0x1] %v363_v38  ;;  %v414_v14 = vsel %vm4085_vm5, 0, %v413_v45  ;;  %v366_v18 = vsel %vm4076_vm3, 0, %v365_v47  ;;  %v416_v4 = vld [vmem:[#allocation2 + $0x80] sm:$0x80]  ;;  %vm4648_vm3 = vmand %vm1796_vm0, %vm369_vm4 }
  0x37   : > { %791 = vrot.lane.b32.xlu1 %v760_v37, %s4024_s8  ;;  %653 = vst [vmem:[#allocation2 + $0x40] sm:$0xff] %v652_v63  ;;  %v657_v40 = vld [vmem:[#allocation2 + $0x50] sm:$0xff]  ;;  %415 = vst [vmem:[#allocation2 + $0x78] sm:$0x80] %v414_v14  ;;  %v417_v52 = vsel %vm4085_vm5, 0, %v416_v4  ;;  %v607_v27 = vrot.slane %v605_v48, 7  ;;  %v596_v37 = vor.u32 %v594_v60, %v593_v1 }
  0x38   : > { %367 = vst [vmem:[#allocation2 + $0x80] sm:$0x1] %v366_v18  ;;  %656 = vst [vmem:[#allocation2 + $0x48] sm:$0xff] %v655_v33  ;;  %v658_v15 = vsel %vm4226_vm9, %v568_v42, %v657_v40  ;;  %v660_v34 = vld [vmem:[#allocation2 + $0x58] sm:$0xff]  ;;  %v608_v51 = vshll.u32 %v4352_v43, 16  ;;  %v663_v56 = vld [vmem:[#allocation2 + $0x60] sm:$0xff] }
  0x39   : > { %700 = vrot.lane.b32.xlu0 %v4190_v5, %s4023_s30  ;;  %418 = vst [vmem:[#allocation2 + $0x80] sm:$0x80] %v417_v52  ;;  %659 = vst [vmem:[#allocation2 + $0x50] sm:$0xff] %v658_v15  ;;  %v661_v32 = vsel %vm4226_vm9, %v575_v59, %v660_v34  ;;  %v664_v55 = vsel %vm4226_vm9, %v582_v26, %v663_v56  ;;  %v666_v11 = vld [vmem:[#allocation2 + $0x68] sm:$0xff]  ;;  %v767_v8 = vrot.slane %v587_v25, 1  ;;  %v769_v35 = vrot.slane %v594_v60, 1 }
  0x3a   : > { %662 = vst [vmem:[#allocation2 + $0x58] sm:$0xff] %v661_v32  ;;  %v610_v19 = vor.u32 %v608_v51, %v607_v27  ;;  %665 = vst [vmem:[#allocation2 + $0x60] sm:$0xff] %v664_v55  ;;  %v667_v39 = vsel %vm4226_vm9, %v589_v0, %v666_v11  ;;  %v771_v25 = vrot.slane %v601_v54, 1  ;;  %v773_v1 = vrot.slane %v608_v51, 1  ;;  %v4490_v58 = vld [vmem:[%s5209_s1 + $0x10] sm:$0x3f]  }
  0x3b   : > { %793 = vrot.lane.b32.xlu1 %v762_v2, %s4024_s8  ;;  %v669_v41 = vld [vmem:[#allocation2 + $0x70] sm:$0xff]  ;;  %668 = vst [vmem:[#allocation2 + $0x68] sm:$0xff] %v667_v39  ;;  %v768_v20 = vor.u32 %v767_v8, %v584_v21  ;;  %v770_v16 = vor.u32 %v769_v35, %v591_v36  ;;  %v4025_v21 = vmov 0   ;;  %v1183_v44 = vsel %vm964_vm8, %v4285_v22, 0 }
  0x3c   : > { %v670_v12 = vsel %vm4226_vm9, %v596_v37, %v669_v41  ;;  %313 = vst.msk [vmem:[#allocation2] sm:$0xff] %vm312_vm10, %v4025_v21  ;;  %315 = vst.msk [vmem:[#allocation2 + $0x88] sm:$0xff] %vm312_vm10, %v4025_v21  ;;  %vm1741_vm4 = vcmask 195584   ;;  %vm1974_vm5 = vcmask 64512  }
  0x3d   : > { %702 = vrot.lane.b32.xlu0 %v4194_v7, %s4023_s30  ;;  %671 = vst [vmem:[#allocation2 + $0x70] sm:$0xff] %v670_v12  ;;  %v772_v7 = vor.u32 %v771_v25, %v598_v23  ;;  %1742 = vst.msk [vmem:[#allocation3] sm:$0xff] %vm1741_vm4, %v4025_v21 }
  0x3e   : > { %v672_v49 = vld [vmem:[#allocation2 + $0x78] sm:$0xff]  ;;  %1744 = vst.msk [vmem:[#allocation3 + $0x88] sm:$0xff] %vm1741_vm4, %v4025_v21  ;;  %vm4756_vm6 = vmand %vm1974_vm5, %vm628_vm7  ;;  %vm2088_vm7 = vcmask 130112  }
  0x3f   : > { %795 = vrot.lane.b32.xlu1 %v764_v3, %s4024_s8  ;;  %v673_v50 = vsel %vm4226_vm9, %v603_v28, %v672_v49 }
  0x40   : > { %v675_v53 = vld [vmem:[#allocation2 + $0x80] sm:$0xff]  ;;  %674 = vst [vmem:[#allocation2 + $0x78] sm:$0xff] %v673_v50 }
  0x41   : > { %704 = vrot.lane.b32.xlu0 %v4259_v46, %s4023_s30  ;;  %v676_v5 = vsel %vm4226_vm9, %v610_v19, %v675_v53  ;;  %v774_v46 = vor.u32 %v773_v1, %v605_v48 }
  0x42   : > { %677 = vst [vmem:[#allocation2 + $0x80] sm:$0xff] %v676_v5 }
  0x43   : > { %797 = vrot.lane.b32.xlu1 %v766_v62, %s4024_s8  ;;  %v1362_v23 = vld [vmem:[#allocation2 + $0x88] sm:$0xff] }
  0x45   : > { %706 = vrot.lane.b32.xlu0 %v4291_v31, %s4023_s30 }
  0x47   : > { %799 = vrot.lane.b32.xlu1 %v768_v20, %s4024_s8 }
  0x49   : > { %708 = vrot.lane.b32.xlu0 %v4352_v43, %s4023_s30 }
  0x4b   : > { %801 = vrot.lane.b32.xlu1 %v770_v16, %s4024_s8 }
  0x4d   : > { %803 = vrot.lane.b32.xlu0 %v772_v7, %s4024_s8 }
  0x4f   : > { %805 = vrot.lane.b32.xlu1 %v774_v46, %s4024_s8 }
  0x83   : > { %v679_v36 = vpop.permute.xlu0 %678  ;;  %v683_v31 = vpop.permute.xlu1 %682 }
  0x84   : > { %727 = vst.msk [vmem:[#allocation2 + $0x8] sm:$0xff] %vm726_vm11, %v679_v36  ;;  %729 = vst.msk [vmem:[#allocation2 + $0x18] sm:$0xff] %vm726_vm11, %v683_v31 }
  0x87   : > { %v681_v60 = vpop.permute.xlu0 %680 }
  0x88   : > { %728 = vst.msk [vmem:[#allocation2 + $0x10] sm:$0xff] %vm726_vm11, %v681_v60 }
  0x89   : > { %v776_v43 = vpop.permute.xlu1 %775 }
  0x8b   : > { %v826_v54 = vld [vmem:[#allocation2 + $0x8] sm:$0xff]  ;;  %v685_v61 = vpop.permute.xlu0 %684  ;;  %v832_v57 = vld [vmem:[#allocation2 + $0x18] sm:$0xff] }
  0x8c   : > { %v4479_v17 = vsel %vm4473_vm14, %v776_v43, %v826_v54  ;;  %730 = vst.msk [vmem:[#allocation2 + $0x20] sm:$0xff] %vm726_vm11, %v685_v61  ;;  %v874_v54 = vld [vmem:[#allocation2] sm:$0xff]  ;;  %v1420_v61 = vsel %vm964_vm8, %v4490_v58, 0 }
  0x8d   : > { %828 = vst [vmem:[#allocation2 + $0x8] sm:$0xff] %v4479_v17  ;;  %3636 = vmatprep.mubr.msk.bf16.mxu0 %vm312_vm10, %v4479_v17  ;;  %v778_v24 = vpop.permute.xlu1 %777 }
  0x8f   : > { %v829_v29 = vld [vmem:[#allocation2 + $0x10] sm:$0xff]  ;;  %v687_v42 = vpop.permute.xlu0 %686 }
  0x90   : > { %v4494_v10 = vsel %vm4473_vm14, %v778_v24, %v829_v29  ;;  %731 = vst.msk [vmem:[#allocation2 + $0x28] sm:$0xff] %vm726_vm11, %v687_v42  ;;  %v1751_v24 = vld [vmem:[#allocation3 + $0x10] sm:$0x1]  ;;  %v1801_v29 = vld [vmem:[#allocation3 + $0x10] sm:$0x80] }
  0x91   : > { %831 = vst [vmem:[#allocation2 + $0x10] sm:$0xff] %v4494_v10  ;;  %3637 = vmatmul.mubr.msk.bf16.vlgmr.msra.gmra.mrb[0].mxu0 %vm312_vm10, %v4494_v10  ;;  %v780_v9 = vpop.permute.xlu1 %779  ;;  %v1752_v42 = vsel %vm4641_vm2, 0, %v1751_v24 }
  0x92   : > { %3669 = vmatpush3.bf16.msra.mxu0 %v1183_v44  ;;  %v4502_v22 = vsel %vm4473_vm14, %v780_v9, %v832_v57  ;;  %1753 = vst [vmem:[#allocation3 + $0x10] sm:$0x1] %v1752_v42  ;;  %v1802_v57 = vsel %vm4648_vm3, 0, %v1801_v29  ;;  %v4009_v44 = vld [vmem:[%s5212_s4 + $0xc] sm:$0xff]  }
  0x93   : > { %v689_v2 = vpop.permute.xlu0 %688  ;;  %3974 = vmatprep.subr.msk.bf16.mxu0 %vm964_vm8, %v4490_v58  ;;  %834 = vst [vmem:[#allocation2 + $0x18] sm:$0xff] %v4502_v22  ;;  %v835_v59 = vld [vmem:[#allocation2 + $0x20] sm:$0xff]  ;;  %3640 = vmatprep.mubr.msk.bf16.mxu0 %vm312_vm10, %v4502_v22  ;;  %v1748_v58 = vld [vmem:[#allocation3 + $0x8] sm:$0x1]  ;;  %1803 = vst [vmem:[#allocation3 + $0x10] sm:$0x80] %v1802_v57 }
  0x94   : > { %732 = vst.msk [vmem:[#allocation2 + $0x30] sm:$0xff] %vm726_vm11, %v689_v2  ;;  %v1749_v9 = vsel %vm4641_vm2, 0, %v1748_v58  ;;  %v1757_v2 = vld [vmem:[#allocation3 + $0x20] sm:$0x1]  ;;  %v4717_v58 = vld [vmem:[%s5210_s2] ss:$0 sm:$0xff]  ;;  %3736 = vmatprep.subr.bf16.mxu1 %v4009_v44 }
  0x95   : > { %v782_v13 = vpop.permute.xlu1 %781  ;;  %1750 = vst [vmem:[#allocation3 + $0x8] sm:$0x1] %v1749_v9  ;;  %v4722_v57 = vld [vmem:[%s5211_s3] ss:$0 sm:$0xff]  ;;  %3737 = vmatpush3.bf16.msra.mxu1 %v4009_v44  ;;  %vm2185_vm8 = vcmask 195712  }
  0x96   : > { %v4512_v30 = vsel %vm4473_vm14, %v782_v13, %v835_v59  ;;  %v1807_v59 = vld [vmem:[#allocation3 + $0x20] sm:$0x80]  ;;  %v1754_v13 = vld [vmem:[#allocation3 + $0x18] sm:$0x1]  ;;  %vm4879_vm9 = vmand %vm2185_vm8, %vm824_vm13 }
  0x97   : > { %v691_v38 = vpop.permute.xlu0 %690  ;;  %837 = vst [vmem:[#allocation2 + $0x20] sm:$0xff] %v4512_v30  ;;  %v838_v45 = vld [vmem:[#allocation2 + $0x28] sm:$0xff] }
  0x98   : > { %733 = vst.msk [vmem:[#allocation2 + $0x38] sm:$0xff] %vm726_vm11, %v691_v38  ;;  %v1758_v38 = vsel %vm4641_vm2, 0, %v1757_v2 }
  0x99   : > { %3641 = vmatmul.mubr.msk.bf16.gmra.mrb[4].mxu0 %vm312_vm10, %v4512_v30  ;;  %v784_v47 = vpop.permute.xlu1 %783  ;;  %1759 = vst [vmem:[#allocation3 + $0x20] sm:$0x1] %v1758_v38 }
  0x9a   : > { %v4520_v48 = vsel %vm4473_vm14, %v784_v47, %v838_v45  ;;  %v1808_v45 = vsel %vm4648_vm3, 0, %v1807_v59  ;;  %v1755_v47 = vsel %vm4641_vm2, 0, %v1754_v13 }
  0x9b   : > { %v693_v63 = vpop.permute.xlu0 %692  ;;  %840 = vst [vmem:[#allocation2 + $0x28] sm:$0xff] %v4520_v48  ;;  %v841_v6 = vld [vmem:[#allocation2 + $0x30] sm:$0xff]  ;;  %3644 = vmatprep.mubr.msk.bf16.mxu0 %vm312_vm10, %v4520_v48  ;;  %1809 = vst [vmem:[#allocation3 + $0x20] sm:$0x80] %v1808_v45 }
  0x9c   : > { %734 = vst.msk [vmem:[#allocation2 + $0x40] sm:$0xff] %vm726_vm11, %v693_v63  ;;  %1756 = vst [vmem:[#allocation3 + $0x18] sm:$0x1] %v1755_v47  ;;  %v1763_v63 = vld [vmem:[#allocation3 + $0x30] sm:$0x1] }
  0x9d   : > { %v786_v14 = vpop.permute.xlu1 %785 }
  0x9e   : > { %v4528_v18 = vsel %vm4473_vm14, %v786_v14, %v841_v6  ;;  %v1813_v6 = vld [vmem:[#allocation3 + $0x30] sm:$0x80]  ;;  %v1760_v14 = vld [vmem:[#allocation3 + $0x28] sm:$0x1] }
  0x9f   : > { %v695_v4 = vpop.permute.xlu0 %694  ;;  %843 = vst [vmem:[#allocation2 + $0x30] sm:$0xff] %v4528_v18  ;;  %v844_v26 = vld [vmem:[#allocation2 + $0x38] sm:$0xff] }
  0xa0   : > { %735 = vst.msk [vmem:[#allocation2 + $0x48] sm:$0xff] %vm726_vm11, %v695_v4  ;;  %v1764_v4 = vsel %vm4641_vm2, 0, %v1763_v63 }
  0xa1   : > { %3645 = vmatmul.mubr.msk.bf16.gmra.mrb[8].mxu0 %vm312_vm10, %v4528_v18  ;;  %v788_v33 = vpop.permute.xlu1 %787  ;;  %1765 = vst [vmem:[#allocation3 + $0x30] sm:$0x1] %v1764_v4 }
  0xa2   : > { %v4536_v40 = vsel %vm4473_vm14, %v788_v33, %v844_v26  ;;  %v1761_v26 = vsel %vm4641_vm2, 0, %v1760_v14 }
  0xa3   : > { %v697_v52 = vpop.permute.xlu0 %696  ;;  %846 = vst [vmem:[#allocation2 + $0x38] sm:$0xff] %v4536_v40  ;;  %v847_v0 = vld [vmem:[#allocation2 + $0x40] sm:$0xff]  ;;  %3648 = vmatprep.mubr.msk.bf16.mxu0 %vm312_vm10, %v4536_v40  ;;  %1762 = vst [vmem:[#allocation3 + $0x28] sm:$0x1] %v1761_v26 }
  0xa4   : > { %736 = vst.msk [vmem:[#allocation2 + $0x50] sm:$0xff] %vm726_vm11, %v697_v52  ;;  %v1769_v52 = vld [vmem:[#allocation3 + $0x40] sm:$0x1] }
  0xa5   : > { %v790_v27 = vpop.permute.xlu1 %789 }
  0xa6   : > { %v4544_v15 = vsel %vm4473_vm14, %v790_v27, %v847_v0  ;;  %v1819_v0 = vld [vmem:[#allocation3 + $0x40] sm:$0x80]  ;;  %v1766_v27 = vld [vmem:[#allocation3 + $0x38] sm:$0x1] }
  0xa7   : > { %v699_v34 = vpop.permute.xlu0 %698  ;;  %849 = vst [vmem:[#allocation2 + $0x40] sm:$0xff] %v4544_v15  ;;  %v850_v3 = vld [vmem:[#allocation2 + $0x48] sm:$0xff] }
  0xa8   : > { %737 = vst.msk [vmem:[#allocation2 + $0x58] sm:$0xff] %vm726_vm11, %v699_v34  ;;  %v1770_v34 = vsel %vm4641_vm2, 0, %v1769_v52 }
  0xa9   : > { %3649 = vmatmul.mubr.msk.bf16.gmra.mrb[12].mxu0 %vm312_vm10, %v4544_v15  ;;  %v792_v37 = vpop.permute.xlu1 %791  ;;  %1771 = vst [vmem:[#allocation3 + $0x40] sm:$0x1] %v1770_v34 }
  0xaa   : > { %v4552_v32 = vsel %vm4473_vm14, %v792_v37, %v850_v3  ;;  %v1820_v3 = vsel %vm4648_vm3, 0, %v1819_v0  ;;  %v1767_v37 = vsel %vm4641_vm2, 0, %v1766_v27 }
  0xab   : > { %v701_v51 = vpop.permute.xlu0 %700  ;;  %852 = vst [vmem:[#allocation2 + $0x48] sm:$0xff] %v4552_v32  ;;  %v853_v56 = vld [vmem:[#allocation2 + $0x50] sm:$0xff]  ;;  %3652 = vmatprep.mubr.msk.bf16.mxu0 %vm312_vm10, %v4552_v32  ;;  %1821 = vst [vmem:[#allocation3 + $0x40] sm:$0x80] %v1820_v3 }
  0xac   : > { %738 = vst.msk [vmem:[#allocation2 + $0x60] sm:$0xff] %vm726_vm11, %v701_v51  ;;  %1768 = vst [vmem:[#allocation3 + $0x38] sm:$0x1] %v1767_v37  ;;  %v1775_v51 = vld [vmem:[#allocation3 + $0x50] sm:$0x1] }
  0xad   : > { %v794_v28 = vpop.permute.xlu1 %793 }
  0xae   : > { %v4560_v55 = vsel %vm4473_vm14, %v794_v28, %v853_v56  ;;  %v1825_v56 = vld [vmem:[#allocation3 + $0x50] sm:$0x80]  ;;  %v1772_v28 = vld [vmem:[#allocation3 + $0x48] sm:$0x1] }
  0xaf   : > { %v703_v11 = vpop.permute.xlu0 %702  ;;  %855 = vst [vmem:[#allocation2 + $0x50] sm:$0xff] %v4560_v55  ;;  %v856_v19 = vld [vmem:[#allocation2 + $0x58] sm:$0xff] }
  0xb0   : > { %739 = vst.msk [vmem:[#allocation2 + $0x68] sm:$0xff] %vm726_vm11, %v703_v11  ;;  %v1776_v11 = vsel %vm4641_vm2, 0, %v1775_v51 }
  0xb1   : > { %3653 = vmatmul.mubr.msk.bf16.gmra.mrb[16].mxu0 %vm312_vm10, %v4560_v55  ;;  %v796_v39 = vpop.permute.xlu1 %795  ;;  %1777 = vst [vmem:[#allocation3 + $0x50] sm:$0x1] %v1776_v11 }
  0xb2   : > { %v857_v41 = vsel %vm4473_vm14, %v796_v39, %v856_v19  ;;  %v1773_v19 = vsel %vm4641_vm2, 0, %v1772_v28 }
  0xb3   : > { %v705_v62 = vpop.permute.xlu0 %704  ;;  %858 = vst [vmem:[#allocation2 + $0x58] sm:$0xff] %v857_v41  ;;  %v859_v8 = vld [vmem:[#allocation2 + $0x60] sm:$0xff]  ;;  %3656 = vmatprep.mubr.msk.bf16.mxu0 %vm312_vm10, %v857_v41  ;;  %1774 = vst [vmem:[#allocation3 + $0x48] sm:$0x1] %v1773_v19 }
  0xb4   : > { %740 = vst.msk [vmem:[#allocation2 + $0x70] sm:$0xff] %vm726_vm11, %v705_v62  ;;  %v1781_v62 = vld [vmem:[#allocation3 + $0x60] sm:$0x1] }
  0xb5   : > { %v798_v12 = vpop.permute.xlu1 %797 }
  0xb6   : > { %v860_v49 = vsel %vm4473_vm14, %v798_v12, %v859_v8  ;;  %v1831_v8 = vld [vmem:[#allocation3 + $0x60] sm:$0x80]  ;;  %v1778_v12 = vld [vmem:[#allocation3 + $0x58] sm:$0x1] }
  0xb7   : > { %v707_v50 = vpop.permute.xlu0 %706  ;;  %861 = vst [vmem:[#allocation2 + $0x60] sm:$0xff] %v860_v49  ;;  %v862_v53 = vld [vmem:[#allocation2 + $0x68] sm:$0xff] }
  0xb8   : > { %741 = vst.msk [vmem:[#allocation2 + $0x78] sm:$0xff] %vm726_vm11, %v707_v50  ;;  %v1782_v50 = vsel %vm4641_vm2, 0, %v1781_v62 }
  0xb9   : > { %3657 = vmatmul.mubr.msk.bf16.gmra.mrb[20].mxu0 %vm312_vm10, %v860_v49  ;;  %v800_v5 = vpop.permute.xlu1 %799  ;;  %1783 = vst [vmem:[#allocation3 + $0x60] sm:$0x1] %v1782_v50  ;;  %v1979_v50 = vld [vmem:[#allocation3 + $0x10] sm:$0xff] }
  0xba   : > { %v863_v20 = vsel %vm4473_vm14, %v800_v5, %v862_v53  ;;  %v1832_v53 = vsel %vm4648_vm3, 0, %v1831_v8  ;;  %v1779_v5 = vsel %vm4641_vm2, 0, %v1778_v12 }
  0xbb   : > { %v709_v35 = vpop.permute.xlu0 %708  ;;  %864 = vst [vmem:[#allocation2 + $0x68] sm:$0xff] %v863_v20  ;;  %v865_v25 = vld [vmem:[#allocation2 + $0x70] sm:$0xff]  ;;  %3660 = vmatprep.mubr.msk.bf16.mxu0 %vm312_vm10, %v863_v20  ;;  %1833 = vst [vmem:[#allocation3 + $0x60] sm:$0x80] %v1832_v53 }
  0xbc   : > { %742 = vst.msk [vmem:[#allocation2 + $0x80] sm:$0xff] %vm726_vm11, %v709_v35  ;;  %1780 = vst [vmem:[#allocation3 + $0x58] sm:$0x1] %v1779_v5  ;;  %v1787_v35 = vld [vmem:[#allocation3 + $0x70] sm:$0x1] }
  0xbd   : > { %v802_v16 = vpop.permute.xlu1 %801 }
  0xbe   : > { %v866_v1 = vsel %vm4473_vm14, %v802_v16, %v865_v25  ;;  %v1837_v25 = vld [vmem:[#allocation3 + $0x70] sm:$0x80]  ;;  %v1784_v16 = vld [vmem:[#allocation3 + $0x68] sm:$0x1] }
  0xbf   : > { %v868_v7 = vld [vmem:[#allocation2 + $0x78] sm:$0xff]  ;;  %v804_v46 = vpop.permute.xlu0 %803  ;;  %867 = vst [vmem:[#allocation2 + $0x70] sm:$0xff] %v866_v1 }
  0xc0   : > { %v869_v36 = vsel %vm4473_vm14, %v804_v46, %v868_v7  ;;  %v1788_v7 = vsel %vm4641_vm2, 0, %v1787_v35  ;;  %v1785_v46 = vsel %vm4641_vm2, 0, %v1784_v16 }
  0xc1   : > { %870 = vst [vmem:[#allocation2 + $0x78] sm:$0xff] %v869_v36  ;;  %3661 = vmatmul.mubr.msk.bf16.gmra.mrb[24].mxu0 %vm312_vm10, %v866_v1  ;;  %v806_v31 = vpop.permute.xlu1 %805  ;;  %1789 = vst [vmem:[#allocation3 + $0x70] sm:$0x1] %v1788_v7 }
  0xc2   : > { %3664 = vmatprep.mubr.msk.bf16.mxu0 %vm312_vm10, %v869_v36  ;;  %1786 = vst [vmem:[#allocation3 + $0x68] sm:$0x1] %v1785_v46 }
  0xc3   : > { %v871_v60 = vld [vmem:[#allocation2 + $0x80] sm:$0xff] }
  0xc4   : > { %v872_v43 = vsel %vm4473_vm14, %v806_v31, %v871_v60  ;;  %v1838_v31 = vsel %vm4648_vm3, 0, %v1837_v25  ;;  %v1793_v60 = vld [vmem:[#allocation3 + $0x80] sm:$0x1] }
  0xc5   : > { %873 = vst [vmem:[#allocation2 + $0x80] sm:$0xff] %v872_v43  ;;  %1839 = vst [vmem:[#allocation3 + $0x70] sm:$0x80] %v1838_v31 }
  0xc9   : > { %3665 = vmatmul.mubr.msk.bf16.gmra.mrb[28].mxu0 %vm312_vm10, %v872_v43 }
  0xca   : > { %3670 = vmatprep.mubr.msk.bf16.mxu0 %vm312_vm10, %v874_v54  ;;  %v1790_v54 = vld [vmem:[#allocation3 + $0x78] sm:$0x1] }
  0xcb   : > { %v1791_v29 = vsel %vm4641_vm2, 0, %v1790_v54 }
  0xcc   : > { %1792 = vst [vmem:[#allocation3 + $0x78] sm:$0x1] %v1791_v29 }
  0xd1   : > { %3671 = vmatmul.mubr.msk.bf16.vlgmr.msra.gmra.mrb[0].mxu0 %vm312_vm10, %v4479_v17 }
  0xd2   : > { %3703 = vmatpush3.bf16.msra.mxu0 %v1420_v61  ;;  %3674 = vmatprep.mubr.msk.bf16.mxu0 %vm312_vm10, %v4494_v10  ;;  %v1840_v61 = vld [vmem:[#allocation3 + $0x78] sm:$0x80] }
  0xd3   : > { %v1841_v42 = vsel %vm4648_vm3, 0, %v1840_v61 }
  0xd4   : > { %1842 = vst [vmem:[#allocation3 + $0x78] sm:$0x80] %v1841_v42 }
  0xd9   : > { %3675 = vmatmul.mubr.msk.bf16.gmra.mrb[4].mxu0 %vm312_vm10, %v4502_v22 }
  0xda   : > { %3678 = vmatprep.mubr.msk.bf16.mxu0 %vm312_vm10, %v4512_v30 }
  0xe1   : > { %3679 = vmatmul.mubr.msk.bf16.gmra.mrb[8].mxu0 %vm312_vm10, %v4520_v48 }
  0xe2   : > { %3682 = vmatprep.mubr.msk.bf16.mxu0 %vm312_vm10, %v4528_v18 }
  0xe9   : > { %3683 = vmatmul.mubr.msk.bf16.gmra.mrb[12].mxu0 %vm312_vm10, %v4536_v40 }
  0xea   : > { %3686 = vmatprep.mubr.msk.bf16.mxu0 %vm312_vm10, %v4544_v15 }
  0xf1   : > { %3687 = vmatmul.mubr.msk.bf16.gmra.mrb[16].mxu0 %vm312_vm10, %v4552_v32 }
  0xf2   : > { %3690 = vmatprep.mubr.msk.bf16.mxu0 %vm312_vm10, %v4560_v55 }
  0xf9   : > { %3691 = vmatmul.mubr.msk.bf16.gmra.mrb[20].mxu0 %vm312_vm10, %v857_v41 }
  0xfa   : > { %3694 = vmatprep.mubr.msk.bf16.mxu0 %vm312_vm10, %v860_v49 }
 0x101   : > { %3695 = vmatmul.mubr.msk.bf16.gmra.mrb[24].mxu0 %vm312_vm10, %v863_v20 }
 0x102   : > { %3698 = vmatprep.mubr.msk.bf16.mxu0 %vm312_vm10, %v866_v1 }
 0x109   : > { %3699 = vmatmul.mubr.msk.bf16.gmra.mrb[28].mxu0 %vm312_vm10, %v869_v36 }
 0x10a   : > { %3704 = vmatprep.mubr.msk.bf16.mxu0 %vm312_vm10, %v4494_v10  ;;  %v1798_v10 = vld [vmem:[#allocation3 + $0x8] sm:$0x80] }
 0x111   : > { %3705 = vmatmul.mubr.msk.bf16.vlgmr.msra.gmra.mrb[0].mxu0 %vm312_vm10, %v4502_v22  ;;  %v1799_v22 = vsel %vm4648_vm3, 0, %v1798_v10 }
 0x112   : > { %3708 = vmatprep.mubr.msk.bf16.mxu0 %vm312_vm10, %v4512_v30  ;;  %1800 = vst [vmem:[#allocation3 + $0x8] sm:$0x80] %v1799_v22  ;;  %v1804_v30 = vld [vmem:[#allocation3 + $0x18] sm:$0x80] }
 0x119   : > { %3709 = vmatmul.mubr.msk.bf16.gmra.mrb[4].mxu0 %vm312_vm10, %v4520_v48  ;;  %v1805_v48 = vsel %vm4648_vm3, 0, %v1804_v30  ;;  %v1976_v35 = vld [vmem:[#allocation3 + $0x8] sm:$0xff] }
 0x11a   : > { %3712 = vmatprep.mubr.msk.bf16.mxu0 %vm312_vm10, %v4528_v18  ;;  %1806 = vst [vmem:[#allocation3 + $0x18] sm:$0x80] %v1805_v48  ;;  %v1810_v18 = vld [vmem:[#allocation3 + $0x28] sm:$0x80]  ;;  %v4010_v48 = vld [vmem:[%s5212_s4 + $0x14] ss:$0 sps:$4 sm:$0xff]  }
 0x11b   : > { %v1811_v33 = vsel %vm4648_vm3, 0, %v1810_v18  ;;  %3975 = vmatprep.subr.msk.bf16.mxu1 %vm2331_vm1, %v4010_v48  ;;  %v2333_v18 = vsel %vm2331_vm1, %v4010_v48, 0 }
 0x11c   : > { %1812 = vst [vmem:[#allocation3 + $0x28] sm:$0x80] %v1811_v33  ;;  %3739 = vmatpush3.bf16.msra.mxu1 %v2333_v18 }
 0x121   : > { %3713 = vmatmul.mubr.msk.bf16.gmra.mrb[8].mxu0 %vm312_vm10, %v4536_v40  ;;  %v1814_v40 = vsel %vm4648_vm3, 0, %v1813_v6 }
 0x122   : > { %3716 = vmatprep.mubr.msk.bf16.mxu0 %vm312_vm10, %v4544_v15  ;;  %1815 = vst [vmem:[#allocation3 + $0x30] sm:$0x80] %v1814_v40  ;;  %v1816_v15 = vld [vmem:[#allocation3 + $0x38] sm:$0x80] }
 0x129   : > { %3717 = vmatmul.mubr.msk.bf16.gmra.mrb[12].mxu0 %vm312_vm10, %v4552_v32  ;;  %v1817_v32 = vsel %vm4648_vm3, 0, %v1816_v15 }
 0x12a   : > { %3720 = vmatprep.mubr.msk.bf16.mxu0 %vm312_vm10, %v4560_v55  ;;  %1818 = vst [vmem:[#allocation3 + $0x38] sm:$0x80] %v1817_v32  ;;  %v1822_v55 = vld [vmem:[#allocation3 + $0x48] sm:$0x80] }
 0x12b   : > { %v1823_v39 = vsel %vm4648_vm3, 0, %v1822_v55 }
 0x12c   : > { %1824 = vst [vmem:[#allocation3 + $0x48] sm:$0x80] %v1823_v39 }
 0x131   : > { %3721 = vmatmul.mubr.msk.bf16.gmra.mrb[16].mxu0 %vm312_vm10, %v857_v41  ;;  %v1826_v41 = vsel %vm4648_vm3, 0, %v1825_v56 }
 0x132   : > { %3724 = vmatprep.mubr.msk.bf16.mxu0 %vm312_vm10, %v860_v49  ;;  %1827 = vst [vmem:[#allocation3 + $0x50] sm:$0x80] %v1826_v41  ;;  %v1828_v49 = vld [vmem:[#allocation3 + $0x58] sm:$0x80] }
 0x139   : > { %3725 = vmatmul.mubr.msk.bf16.gmra.mrb[20].mxu0 %vm312_vm10, %v863_v20  ;;  %v1829_v20 = vsel %vm4648_vm3, 0, %v1828_v49 }
 0x13a   : > { %3728 = vmatprep.mubr.msk.bf16.mxu0 %vm312_vm10, %v866_v1  ;;  %1830 = vst [vmem:[#allocation3 + $0x58] sm:$0x80] %v1829_v20  ;;  %v1834_v1 = vld [vmem:[#allocation3 + $0x68] sm:$0x80] }
 0x141   : > { %3729 = vmatmul.mubr.msk.bf16.gmra.mrb[24].mxu0 %vm312_vm10, %v869_v36  ;;  %v1835_v36 = vsel %vm4648_vm3, 0, %v1834_v1 }
 0x142   : > { %3732 = vmatprep.mubr.msk.bf16.mxu0 %vm312_vm10, %v872_v43  ;;  %1836 = vst [vmem:[#allocation3 + $0x68] sm:$0x80] %v1835_v36  ;;  %v1843_v43 = vld [vmem:[#allocation3 + $0x80] sm:$0x80] }
 0x143   : > { %v1844_v24 = vsel %vm4648_vm3, 0, %v1843_v43 }
 0x144   : > { %1845 = vst [vmem:[#allocation3 + $0x80] sm:$0x80] %v1844_v24 }
 0x149   : > { %3733 = vmatmul.mubr.msk.bf16.gmra.mrb[28].mxu0 %vm312_vm10, %v1362_v23  ;;  %v1794_v23 = vsel %vm4641_vm2, 0, %v1793_v60  ;;  %vm3229_vm10 = vcmask 60416  }
 0x14a   : > { %1795 = vst [vmem:[#allocation3 + $0x80] sm:$0x1] %v1794_v23 }
 0x1e4   : > { %v3706_v10 = vpop.f32.mrb[0].mxu0 }
 0x1e5   : > { %v1624_v17 = vmul.f32 %v3706_v10, %v4717_v58  ;;  %v1456_v9 = vpop.f32.mrb[1].mxu0 }
 0x1e6   : > { %v1622_v22 = vmul.f32 %v4717_v58, %v1456_v9  ;;  %v3707_v2 = vpop.f32.mrb[2].mxu0 }
 0x1e7   : > { %v1663_v59 = vadd.f32 %v4722_v57, %v1624_v17  ;;  %v1625_v13 = vmul.f32 %v3707_v2, %v4717_v58  ;;  %v1459_v30 = vpop.f32.mrb[3].mxu0 }
 0x1e8   : > { %v1661_v38 = vadd.f32 %v4722_v57, %v1622_v22  ;;  %v1623_v45 = vmul.f32 %v4717_v58, %v1459_v30  ;;  %v4775_v30 = vld [vmem:[%s5212_s4] sm:$0xff]  }
 0x1e9   : > { %v1664_v47 = vadd.f32 %v4722_v57, %v1625_v13  ;;  %v1695_v6 = vmax.f32 %v1663_v59, 0.0  ;;  %3772 = vmatprep.subr.bf16.mxu1 %v4775_v30 }
 0x1ea   : > { %v1662_v63 = vadd.f32 %v4722_v57, %v1623_v45  ;;  %v1693_v4 = vmax.f32 %v1661_v38, 0.0 }
 0x1eb   : > { %v1696_v14 = vmax.f32 %v1664_v47, 0.0 }
 0x1ec   : > { %v1694_v26 = vmax.f32 %v1662_v63, 0.0  ;;  %v3710_v33 = vpop.f32.mrb[4].mxu0 }
 0x1ed   : > { %v1628_v40 = vmul.f32 %v3710_v33, %v4717_v58  ;;  %v1472_v52 = vpop.f32.mrb[5].mxu0  ;;  %v1726_v0 = vpack.c.bf16 %v1696_v14, %v1695_v6  ;;  %v1985_v14 = vld [vmem:[#allocation3 + $0x20] sm:$0xff]  ;;  %v1982_v33 = vld [vmem:[#allocation3 + $0x18] sm:$0xff] }
 0x1ee   : > { %v1626_v27 = vmul.f32 %v4717_v58, %v1472_v52  ;;  %v3711_v15 = vpop.f32.mrb[6].mxu0  ;;  %v1725_v34 = vpack.c.bf16 %v1694_v26, %v1693_v4 }
 0x1ef   : > { %v1667_v3 = vadd.f32 %v4722_v57, %v1628_v40  ;;  %v1629_v37 = vmul.f32 %v3711_v15, %v4717_v58  ;;  %2042 = vrot.lane.b32.xlu1 %v1726_v0, %s4024_s8  ;;  %v1475_v32 = vpop.f32.mrb[7].mxu0  ;;  %v1854_v51 = vshrl.u32 %v1726_v0, 16  ;;  %v1857_v56 = vshll.u32 %v1726_v0, 16 }
 0x1f0   : > { %v1665_v28 = vadd.f32 %v4722_v57, %v1626_v27  ;;  %v1627_v55 = vmul.f32 %v4717_v58, %v1475_v32  ;;  %2040 = vrot.lane.b32.xlu0 %v1725_v34, %s4024_s8  ;;  %v1847_v21 = vshrl.u32 %v1725_v34, 16  ;;  %v1850_v11 = vshll.u32 %v1725_v34, 16 }
 0x1f1   : > { %v1668_v19 = vadd.f32 %v4722_v57, %v1629_v37  ;;  %v1856_v39 = vrot.slane %v1854_v51, 7  ;;  %v2107_v12 = vrot.slane %v1857_v56, 1  ;;  %v1699_v53 = vmax.f32 %v1667_v3, 0.0 }
 0x1f2   : > { %v1666_v41 = vadd.f32 %v4722_v57, %v1627_v55  ;;  %v2105_v62 = vrot.slane %v1850_v11, 1  ;;  %v1849_v8 = vrot.slane %v1847_v21, 7  ;;  %v1697_v25 = vmax.f32 %v1665_v28, 0.0 }
 0x1f3   : > { %v1700_v5 = vmax.f32 %v1668_v19, 0.0  ;;  %v1859_v20 = vor.u32 %v1857_v56, %v1856_v39  ;;  %v2108_v24 = vor.u32 %v2107_v12, %v1854_v51 }
 0x1f4   : > { %v1698_v16 = vmax.f32 %v1666_v41, 0.0  ;;  %v3714_v1 = vpop.f32.mrb[8].mxu0  ;;  %v2106_v7 = vor.u32 %v2105_v62, %v1847_v21  ;;  %v1852_v46 = vor.u32 %v1850_v11, %v1849_v8 }
 0x1f5   : > { %v1632_v36 = vmul.f32 %v3714_v1, %v4717_v58  ;;  %v1488_v31 = vpop.f32.mrb[9].mxu0  ;;  %v1728_v60 = vpack.c.bf16 %v1700_v5, %v1699_v53  ;;  %v1980_v43 = vsel %vm4756_vm6, %v1859_v20, %v1979_v50 }
 0x1f6   : > { %v1630_v54 = vmul.f32 %v4717_v58, %v1488_v31  ;;  %2137 = vrot.lane.b32.xlu1 %v2106_v7, %s4026_s23  ;;  %v3715_v61 = vpop.f32.mrb[10].mxu0  ;;  %v1727_v23 = vpack.c.bf16 %v1698_v16, %v1697_v25  ;;  %1981 = vst [vmem:[#allocation3 + $0x10] sm:$0xff] %v1980_v43  ;;  %v1977_v29 = vsel %vm4756_vm6, %v1852_v46, %v1976_v35  ;;  %v1991_v7 = vld [vmem:[#allocation3 + $0x30] sm:$0xff] }
 0x1f7   : > { %v1671_v42 = vadd.f32 %v4722_v57, %v1632_v36  ;;  %v1633_v10 = vmul.f32 %v3715_v61, %v4717_v58  ;;  %v1491_v17 = vpop.f32.mrb[11].mxu0  ;;  %v1868_v9 = vshrl.u32 %v1728_v60, 16  ;;  %v1871_v44 = vshll.u32 %v1728_v60, 16  ;;  %1978 = vst [vmem:[#allocation3 + $0x8] sm:$0xff] %v1977_v29 }
 0x1f8   : > { %v1669_v22 = vadd.f32 %v4722_v57, %v1630_v54  ;;  %v1631_v2 = vmul.f32 %v4717_v58, %v1491_v17  ;;  %2044 = vrot.lane.b32.xlu0 %v1727_v23, %s4024_s8  ;;  %v1861_v59 = vshrl.u32 %v1727_v23, 16  ;;  %v1864_v13 = vshll.u32 %v1727_v23, 16 }
 0x1f9   : > { %v1672_v38 = vadd.f32 %v4722_v57, %v1633_v10  ;;  %v1870_v45 = vrot.slane %v1868_v9, 7  ;;  %v2111_v6 = vrot.slane %v1871_v44, 1  ;;  %v1703_v18 = vmax.f32 %v1671_v42, 0.0 }
 0x1fa   : > { %v1670_v47 = vadd.f32 %v4722_v57, %v1631_v2  ;;  %2139 = vrot.lane.b32.xlu1 %v2108_v24, %s4026_s23  ;;  %v2109_v48 = vrot.slane %v1864_v13, 1  ;;  %v1863_v63 = vrot.slane %v1861_v59, 7  ;;  %v1701_v40 = vmax.f32 %v1669_v22, 0.0 }
 0x1fb   : > { %v1704_v4 = vmax.f32 %v1672_v38, 0.0  ;;  %v1873_v26 = vor.u32 %v1871_v44, %v1870_v45  ;;  %v2112_v55 = vor.u32 %v2111_v6, %v1868_v9 }
 0x1fc   : > { %v1702_v52 = vmax.f32 %v1670_v47, 0.0  ;;  %2046 = vrot.lane.b32.xlu0 %v1728_v60, %s4024_s8  ;;  %v3718_v0 = vpop.f32.mrb[12].mxu0  ;;  %v2110_v27 = vor.u32 %v2109_v48, %v1861_v59  ;;  %v1866_v15 = vor.u32 %v1864_v13, %v1863_v63  ;;  %v1988_v60 = vld [vmem:[#allocation3 + $0x28] sm:$0xff] }
 0x1fd   : > { %v1636_v34 = vmul.f32 %v3718_v0, %v4717_v58  ;;  %v1504_v3 = vpop.f32.mrb[13].mxu0  ;;  %v1730_v37 = vpack.c.bf16 %v1704_v4, %v1703_v18  ;;  %v1986_v32 = vsel %vm4756_vm6, %v1873_v26, %v1985_v14 }
 0x1fe   : > { %v1634_v51 = vmul.f32 %v4717_v58, %v1504_v3  ;;  %2141 = vrot.lane.b32.xlu1 %v2110_v27, %s4026_s23  ;;  %v3719_v56 = vpop.f32.mrb[14].mxu0  ;;  %v1729_v28 = vpack.c.bf16 %v1702_v52, %v1701_v40  ;;  %v1983_v21 = vsel %vm4756_vm6, %v1866_v15, %v1982_v33  ;;  %1987 = vst [vmem:[#allocation3 + $0x20] sm:$0xff] %v1986_v32  ;;  %v1997_v27 = vld [vmem:[#allocation3 + $0x40] sm:$0xff] }
 0x1ff   : > { %v1675_v11 = vadd.f32 %v4722_v57, %v1636_v34  ;;  %v1637_v19 = vmul.f32 %v3719_v56, %v4717_v58  ;;  %v1507_v39 = vpop.f32.mrb[15].mxu0  ;;  %v1882_v41 = vshrl.u32 %v1730_v37, 16  ;;  %v1885_v62 = vshll.u32 %v1730_v37, 16  ;;  %1984 = vst [vmem:[#allocation3 + $0x18] sm:$0xff] %v1983_v21 }
 0x200   : > { %v1673_v8 = vadd.f32 %v4722_v57, %v1634_v51  ;;  %v1635_v12 = vmul.f32 %v4717_v58, %v1507_v39  ;;  %2048 = vrot.lane.b32.xlu0 %v1729_v28, %s4024_s8  ;;  %v1875_v50 = vshrl.u32 %v1729_v28, 16  ;;  %v1878_v53 = vshll.u32 %v1729_v28, 16 }
 0x201   : > { %v1676_v5 = vadd.f32 %v4722_v57, %v1637_v19  ;;  %v1884_v20 = vrot.slane %v1882_v41, 7  ;;  %v2115_v1 = vrot.slane %v1885_v62, 1  ;;  %v1707_v46 = vmax.f32 %v1675_v11, 0.0 }
 0x202   : > { %v1674_v35 = vadd.f32 %v4722_v57, %v1635_v12  ;;  %2143 = vrot.lane.b32.xlu1 %v2112_v55, %s4026_s23  ;;  %v2113_v25 = vrot.slane %v1878_v53, 1  ;;  %v1877_v16 = vrot.slane %v1875_v50, 7  ;;  %v1705_v43 = vmax.f32 %v1673_v8, 0.0 }
 0x203   : > { %v1708_v36 = vmax.f32 %v1676_v5, 0.0  ;;  %v1887_v31 = vor.u32 %v1885_v62, %v1884_v20  ;;  %v2116_v2 = vor.u32 %v2115_v1, %v1882_v41 }
 0x204   : > { %v1706_v54 = vmax.f32 %v1674_v35, 0.0  ;;  %2050 = vrot.lane.b32.xlu0 %v1730_v37, %s4024_s8  ;;  %v3722_v61 = vpop.f32.mrb[16].mxu0  ;;  %v2114_v23 = vor.u32 %v2113_v25, %v1875_v50  ;;  %v1880_v24 = vor.u32 %v1878_v53, %v1877_v16  ;;  %v1994_v37 = vld [vmem:[#allocation3 + $0x38] sm:$0xff] }
 0x205   : > { %v1640_v29 = vmul.f32 %v3722_v61, %v4717_v58  ;;  %v1520_v42 = vpop.f32.mrb[17].mxu0  ;;  %v1732_v10 = vpack.c.bf16 %v1708_v36, %v1707_v46  ;;  %v1992_v17 = vsel %vm4756_vm6, %v1887_v31, %v1991_v7 }
 0x206   : > { %v1638_v9 = vmul.f32 %v4717_v58, %v1520_v42  ;;  %2145 = vrot.lane.b32.xlu1 %v2114_v23, %s4026_s23  ;;  %v3723_v44 = vpop.f32.mrb[18].mxu0  ;;  %v1731_v22 = vpack.c.bf16 %v1706_v54, %v1705_v43  ;;  %v1989_v59 = vsel %vm4756_vm6, %v1880_v24, %v1988_v60  ;;  %1993 = vst [vmem:[#allocation3 + $0x30] sm:$0xff] %v1992_v17  ;;  %v2003_v23 = vld [vmem:[#allocation3 + $0x50] sm:$0xff] }
 0x207   : > { %v1679_v13 = vadd.f32 %v4722_v57, %v1640_v29  ;;  %v1641_v38 = vmul.f32 %v3723_v44, %v4717_v58  ;;  %v1523_v45 = vpop.f32.mrb[19].mxu0  ;;  %v1896_v47 = vshrl.u32 %v1732_v10, 16  ;;  %v1899_v48 = vshll.u32 %v1732_v10, 16  ;;  %1990 = vst [vmem:[#allocation3 + $0x28] sm:$0xff] %v1989_v59 }
 0x208   : > { %v1677_v63 = vadd.f32 %v4722_v57, %v1638_v9  ;;  %v1639_v6 = vmul.f32 %v4717_v58, %v1523_v45  ;;  %2052 = vrot.lane.b32.xlu0 %v1731_v22, %s4024_s8  ;;  %v1889_v14 = vshrl.u32 %v1731_v22, 16  ;;  %v1892_v18 = vshll.u32 %v1731_v22, 16 }
 0x209   : > { %v1680_v4 = vadd.f32 %v4722_v57, %v1641_v38  ;;  %v1898_v26 = vrot.slane %v1896_v47, 7  ;;  %v2119_v0 = vrot.slane %v1899_v48, 1  ;;  %v1711_v15 = vmax.f32 %v1679_v13, 0.0 }
 0x20a   : > { %v1678_v33 = vadd.f32 %v4722_v57, %v1639_v6  ;;  %2147 = vrot.lane.b32.xlu1 %v2116_v2, %s4026_s23  ;;  %v2117_v40 = vrot.slane %v1892_v18, 1  ;;  %v1891_v52 = vrot.slane %v1889_v14, 7  ;;  %v1709_v32 = vmax.f32 %v1677_v63, 0.0 }
 0x20b   : > { %v1712_v34 = vmax.f32 %v1680_v4, 0.0  ;;  %v1901_v3 = vor.u32 %v1899_v48, %v1898_v26  ;;  %v2120_v12 = vor.u32 %v2119_v0, %v1896_v47 }
 0x20c   : > { %v1710_v51 = vmax.f32 %v1678_v33, 0.0  ;;  %2054 = vrot.lane.b32.xlu0 %v1732_v10, %s4024_s8  ;;  %v3726_v56 = vpop.f32.mrb[20].mxu0  ;;  %v2118_v28 = vor.u32 %v2117_v40, %v1889_v14  ;;  %v1894_v55 = vor.u32 %v1892_v18, %v1891_v52  ;;  %v2000_v10 = vld [vmem:[#allocation3 + $0x48] sm:$0xff] }
 0x20d   : > { %v1644_v21 = vmul.f32 %v3726_v56, %v4717_v58  ;;  %v1536_v11 = vpop.f32.mrb[21].mxu0  ;;  %v1734_v19 = vpack.c.bf16 %v1712_v34, %v1711_v15  ;;  %v1998_v39 = vsel %vm4756_vm6, %v1901_v3, %v1997_v27 }
 0x20e   : > { %v1642_v41 = vmul.f32 %v4717_v58, %v1536_v11  ;;  %2149 = vrot.lane.b32.xlu1 %v2118_v28, %s4026_s23  ;;  %v3727_v62 = vpop.f32.mrb[22].mxu0  ;;  %v1733_v8 = vpack.c.bf16 %v1710_v51, %v1709_v32  ;;  %v1995_v50 = vsel %vm4756_vm6, %v1894_v55, %v1994_v37  ;;  %1999 = vst [vmem:[#allocation3 + $0x40] sm:$0xff] %v1998_v39  ;;  %v2009_v28 = vld [vmem:[#allocation3 + $0x60] sm:$0xff] }
 0x20f   : > { %v1683_v53 = vadd.f32 %v4722_v57, %v1644_v21  ;;  %v1645_v5 = vmul.f32 %v3727_v62, %v4717_v58  ;;  %v1539_v20 = vpop.f32.mrb[23].mxu0  ;;  %v1910_v35 = vshrl.u32 %v1734_v19, 16  ;;  %v1913_v25 = vshll.u32 %v1734_v19, 16  ;;  %1996 = vst [vmem:[#allocation3 + $0x38] sm:$0xff] %v1995_v50 }
 0x210   : > { %v1681_v16 = vadd.f32 %v4722_v57, %v1642_v41  ;;  %v1643_v1 = vmul.f32 %v4717_v58, %v1539_v20  ;;  %2056 = vrot.lane.b32.xlu0 %v1733_v8, %s4024_s8  ;;  %v1903_v7 = vshrl.u32 %v1733_v8, 16  ;;  %v1906_v46 = vshll.u32 %v1733_v8, 16 }
 0x211   : > { %v1684_v36 = vadd.f32 %v4722_v57, %v1645_v5  ;;  %v1912_v31 = vrot.slane %v1910_v35, 7  ;;  %v2123_v61 = vrot.slane %v1913_v25, 1  ;;  %v1715_v24 = vmax.f32 %v1683_v53, 0.0 }
 0x212   : > { %v1682_v60 = vadd.f32 %v4722_v57, %v1643_v1  ;;  %2151 = vrot.lane.b32.xlu1 %v2120_v12, %s4026_s23  ;;  %v2121_v43 = vrot.slane %v1906_v46, 1  ;;  %v1905_v54 = vrot.slane %v1903_v7, 7  ;;  %v1713_v17 = vmax.f32 %v1681_v16, 0.0 }
 0x213   : > { %v1716_v29 = vmax.f32 %v1684_v36, 0.0  ;;  %v1915_v42 = vor.u32 %v1913_v25, %v1912_v31  ;;  %v2124_v6 = vor.u32 %v2123_v61, %v1910_v35 }
 0x214   : > { %v1714_v9 = vmax.f32 %v1682_v60, 0.0  ;;  %2058 = vrot.lane.b32.xlu0 %v1734_v19, %s4024_s8  ;;  %v3730_v44 = vpop.f32.mrb[24].mxu0  ;;  %v2122_v22 = vor.u32 %v2121_v43, %v1903_v7  ;;  %v1908_v2 = vor.u32 %v1906_v46, %v1905_v54  ;;  %v2006_v19 = vld [vmem:[#allocation3 + $0x58] sm:$0xff] }
 0x215   : > { %v1648_v59 = vmul.f32 %v3730_v44, %v4717_v58  ;;  %v1552_v13 = vpop.f32.mrb[25].mxu0  ;;  %v1736_v38 = vpack.c.bf16 %v1716_v29, %v1715_v24  ;;  %v2004_v45 = vsel %vm4756_vm6, %v1915_v42, %v2003_v23  ;;  %v2015_v44 = vld [vmem:[#allocation3 + $0x70] sm:$0xff] }
 0x216   : > { %v1646_v47 = vmul.f32 %v4717_v58, %v1552_v13  ;;  %2153 = vrot.lane.b32.xlu1 %v2122_v22, %s4026_s23  ;;  %v3731_v48 = vpop.f32.mrb[26].mxu0  ;;  %v1735_v63 = vpack.c.bf16 %v1714_v9, %v1713_v17  ;;  %v2001_v14 = vsel %vm4756_vm6, %v1908_v2, %v2000_v10  ;;  %2005 = vst [vmem:[#allocation3 + $0x50] sm:$0xff] %v2004_v45 }
 0x217   : > { %v1687_v18 = vadd.f32 %v4722_v57, %v1648_v59  ;;  %v1649_v4 = vmul.f32 %v3731_v48, %v4717_v58  ;;  %v1555_v26 = vpop.f32.mrb[27].mxu0  ;;  %v1924_v33 = vshrl.u32 %v1736_v38, 16  ;;  %v1927_v40 = vshll.u32 %v1736_v38, 16  ;;  %2002 = vst [vmem:[#allocation3 + $0x48] sm:$0xff] %v2001_v14 }
 0x218   : > { %v1685_v52 = vadd.f32 %v4722_v57, %v1646_v47  ;;  %v1647_v0 = vmul.f32 %v4717_v58, %v1555_v26  ;;  %2060 = vrot.lane.b32.xlu0 %v1735_v63, %s4024_s8  ;;  %v1917_v27 = vshrl.u32 %v1735_v63, 16  ;;  %v1920_v15 = vshll.u32 %v1735_v63, 16 }
 0x219   : > { %v1688_v34 = vadd.f32 %v4722_v57, %v1649_v4  ;;  %v1926_v3 = vrot.slane %v1924_v33, 7  ;;  %v2127_v56 = vrot.slane %v1927_v40, 1  ;;  %v1719_v55 = vmax.f32 %v1687_v18, 0.0 }
 0x21a   : > { %v1686_v37 = vadd.f32 %v4722_v57, %v1647_v0  ;;  %2155 = vrot.lane.b32.xlu1 %v2124_v6, %s4026_s23  ;;  %v2125_v32 = vrot.slane %v1920_v15, 1  ;;  %v1919_v51 = vrot.slane %v1917_v27, 7  ;;  %v1717_v39 = vmax.f32 %v1685_v52, 0.0 }
 0x21b   : > { %v1720_v21 = vmax.f32 %v1688_v34, 0.0  ;;  %v1929_v11 = vor.u32 %v1927_v40, %v1926_v3  ;;  %v2128_v1 = vor.u32 %v2127_v56, %v1924_v33  ;;  %v2021_v34 = vld [vmem:[#allocation3 + $0x80] sm:$0xff] }
 0x21c   : > { %v1718_v41 = vmax.f32 %v1686_v37, 0.0  ;;  %2062 = vrot.lane.b32.xlu0 %v1736_v38, %s4024_s8  ;;  %v3734_v62 = vpop.f32.mrb[28].mxu0  ;;  %v2126_v8 = vor.u32 %v2125_v32, %v1917_v27  ;;  %v1922_v12 = vor.u32 %v1920_v15, %v1919_v51  ;;  %v2012_v38 = vld [vmem:[#allocation3 + $0x68] sm:$0xff]  ;;  %v2018_v32 = vld [vmem:[#allocation3 + $0x78] sm:$0xff] }
 0x21d   : > { %v1652_v50 = vmul.f32 %v3734_v62, %v4717_v58  ;;  %v1568_v53 = vpop.f32.mrb[29].mxu0  ;;  %v1738_v5 = vpack.c.bf16 %v1720_v21, %v1719_v55  ;;  %v2010_v20 = vsel %vm4756_vm6, %v1929_v11, %v2009_v28 }
 0x21e   : > { %v1650_v35 = vmul.f32 %v4717_v58, %v1568_v53  ;;  %2157 = vrot.lane.b32.xlu1 %v2126_v8, %s4026_s23  ;;  %v3735_v25 = vpop.f32.mrb[30].mxu0  ;;  %v1737_v16 = vpack.c.bf16 %v1718_v41, %v1717_v39  ;;  %v2007_v7 = vsel %vm4756_vm6, %v1922_v12, %v2006_v19  ;;  %2011 = vst [vmem:[#allocation3 + $0x60] sm:$0xff] %v2010_v20 }
 0x21f   : > { %v1691_v46 = vadd.f32 %v4722_v57, %v1652_v50  ;;  %v1653_v36 = vmul.f32 %v3735_v25, %v4717_v58  ;;  %v1571_v31 = vpop.f32.mrb[31].mxu0  ;;  %v1938_v60 = vshrl.u32 %v1738_v5, 16  ;;  %v1941_v43 = vshll.u32 %v1738_v5, 16  ;;  %2008 = vst [vmem:[#allocation3 + $0x58] sm:$0xff] %v2007_v7  ;;  %v4012_v50 = vld [vmem:[%s5212_s4 + $0x8] ss:$0 sps:$4 sm:$0xff]  }
 0x220   : > { %v1689_v54 = vadd.f32 %v4722_v57, %v1650_v35  ;;  %v1651_v61 = vmul.f32 %v4717_v58, %v1571_v31  ;;  %2064 = vrot.lane.b32.xlu0 %v1737_v16, %s4024_s8  ;;  %v1931_v23 = vshrl.u32 %v1737_v16, 16  ;;  %v1934_v24 = vshll.u32 %v1737_v16, 16  ;;  %v4908_v25 = vld [vmem:[%s5212_s4 + $0x18] sm:$0xff]  }
 0x221   : > { %v1692_v29 = vadd.f32 %v4722_v57, %v1653_v36  ;;  %v1940_v42 = vrot.slane %v1938_v60, 7  ;;  %v1723_v22 = vmax.f32 %v1691_v46, 0.0  ;;  %v2131_v13 = vrot.slane %v1941_v43, 1 }
 0x222   : > { %v1690_v10 = vadd.f32 %v4722_v57, %v1651_v61  ;;  %2159 = vrot.lane.b32.xlu1 %v2128_v1, %s4026_s23  ;;  %v2129_v17 = vrot.slane %v1934_v24, 1  ;;  %v1933_v9 = vrot.slane %v1931_v23, 7  ;;  %v1721_v58 = vmax.f32 %v1689_v54, 0.0 }
 0x223   : > { %v1724_v2 = vmax.f32 %v1692_v29, 0.0  ;;  %v1943_v59 = vor.u32 %v1941_v43, %v1940_v42  ;;  %v2132_v26 = vor.u32 %v2131_v13, %v1938_v60  ;;  %v2554_v35 = vsel %vm2331_vm1, %v4012_v50, 0 }
 0x224   : > { %v1722_v45 = vmax.f32 %v1690_v10, 0.0  ;;  %2066 = vrot.lane.b32.xlu0 %v1738_v5, %s4024_s8  ;;  %v2130_v47 = vor.u32 %v2129_v17, %v1931_v23  ;;  %v1936_v48 = vor.u32 %v1934_v24, %v1933_v9 }
 0x225   : > { %v1740_v63 = vpack.c.bf16 %v1724_v2, %v1723_v22  ;;  %v2016_v57 = vsel %vm4756_vm6, %v1943_v59, %v2015_v44 }
 0x226   : > { %2161 = vrot.lane.b32.xlu1 %v2130_v47, %s4026_s23  ;;  %v1739_v6 = vpack.c.bf16 %v1722_v45, %v1721_v58  ;;  %v2013_v14 = vsel %vm4756_vm6, %v1936_v48, %v2012_v38  ;;  %2017 = vst [vmem:[#allocation3 + $0x70] sm:$0xff] %v2016_v57 }
 0x227   : > { %v1952_v18 = vshrl.u32 %v1740_v63, 16  ;;  %v1955_v4 = vshll.u32 %v1740_v63, 16  ;;  %2014 = vst [vmem:[#allocation3 + $0x68] sm:$0xff] %v2013_v14 }
 0x228   : > { %2068 = vrot.lane.b32.xlu0 %v1739_v6, %s4024_s8  ;;  %v1945_v33 = vshrl.u32 %v1739_v6, 16  ;;  %v1948_v40 = vshll.u32 %v1739_v6, 16 }
 0x229   : > { %v2135_v52 = vrot.slane %v1955_v4, 1  ;;  %v1954_v0 = vrot.slane %v1952_v18, 7 }
 0x22a   : > { %2163 = vrot.lane.b32.xlu1 %v2132_v26, %s4026_s23  ;;  %v2133_v27 = vrot.slane %v1948_v40, 1  ;;  %v1947_v15 = vrot.slane %v1945_v33, 7 }
 0x22b   : > { %v2136_v3 = vor.u32 %v2135_v52, %v1952_v18  ;;  %v1957_v37 = vor.u32 %v1955_v4, %v1954_v0 }
 0x22c   : > { %2070 = vrot.lane.b32.xlu0 %v1740_v63, %s4024_s8  ;;  %v1950_v51 = vor.u32 %v1948_v40, %v1947_v15  ;;  %v2134_v28 = vor.u32 %v2133_v27, %v1945_v33 }
 0x22d   : > { %v2022_v56 = vsel %vm4756_vm6, %v1957_v37, %v2021_v34 }
 0x22e   : > { %2167 = vrot.lane.b32.xlu1 %v2136_v3, %s4026_s23  ;;  %v2019_v55 = vsel %vm4756_vm6, %v1950_v51, %v2018_v32  ;;  %2023 = vst [vmem:[#allocation3 + $0x80] sm:$0xff] %v2022_v56 }
 0x22f   : > { %2020 = vst [vmem:[#allocation3 + $0x78] sm:$0xff] %v2019_v55 }
 0x230   : > { %2165 = vrot.lane.b32.xlu0 %v2134_v28, %s4026_s23 }
 0x261   : > { %v2043_v21 = vpop.permute.xlu1 %2042 }
 0x262   : > { %2090 = vst.msk [vmem:[#allocation3 + $0x10] sm:$0xff] %vm2088_vm7, %v2043_v21  ;;  %v2041_v11 = vpop.permute.xlu0 %2040 }
 0x263   : > { %2089 = vst.msk [vmem:[#allocation3 + $0x8] sm:$0xff] %vm2088_vm7, %v2041_v11 }
 0x268   : > { %v2138_v39 = vpop.permute.xlu1 %2137 }
 0x269   : > { %v2190_v8 = vld [vmem:[#allocation3 + $0x10] sm:$0xff] }
 0x26a   : > { %v2187_v49 = vld [vmem:[#allocation3 + $0x8] sm:$0xff]  ;;  %v2045_v41 = vpop.permute.xlu0 %2044 }
 0x26b   : > { %v4885_v62 = vsel %vm4879_vm9, %v2138_v39, %v2187_v49  ;;  %2091 = vst.msk [vmem:[#allocation3 + $0x18] sm:$0xff] %vm2088_vm7, %v2045_v41  ;;  %v2235_v49 = vld [vmem:[#allocation3] sm:$0xff] }
 0x26c   : > { %2189 = vst [vmem:[#allocation3 + $0x8] sm:$0xff] %v4885_v62  ;;  %v2140_v12 = vpop.permute.xlu1 %2139  ;;  %3740 = vmatprep.mubr.msk.bf16.mxu1 %vm1741_vm4, %v4885_v62 }
 0x26d   : > { %v4896_v53 = vsel %vm4879_vm9, %v2140_v12, %v2190_v8  ;;  %v4014_v8 = vld [vmem:[%s5212_s4 + $0x20] ss:$0 sps:$4 sm:$0xff]  }
 0x26e   : > { %2192 = vst [vmem:[#allocation3 + $0x10] sm:$0xff] %v4896_v53  ;;  %v2047_v5 = vpop.permute.xlu0 %2046  ;;  %3741 = vmatmul.mubr.msk.bf16.vlgmr.msra.gmra.mrb[0].mxu1 %vm1741_vm4, %v4896_v53  ;;  %v2796_v19 = vsel %vm2331_vm1, %v4014_v8, 0  ;;  %v5063_v12 = vld [vmem:[%s5213_s5] ss:$0 sm:$0xff] }
 0x26f   : > { %2092 = vst.msk [vmem:[#allocation3 + $0x20] sm:$0xff] %vm2088_vm7, %v2047_v5  ;;  %3773 = vmatpush3.bf16.msra.mxu1 %v4775_v30 }
 0x270   : > { %v2142_v20 = vpop.permute.xlu1 %2141  ;;  %3976 = vmatprep.subr.msk.bf16.mxu1 %vm2331_vm1, %v4012_v50 }
 0x272   : > { %v2193_v16 = vld [vmem:[#allocation3 + $0x18] sm:$0xff]  ;;  %v2049_v1 = vpop.permute.xlu0 %2048 }
 0x273   : > { %v4912_v7 = vsel %vm4879_vm9, %v2142_v20, %v2193_v16  ;;  %2093 = vst.msk [vmem:[#allocation3 + $0x28] sm:$0xff] %vm2088_vm7, %v2049_v1  ;;  %3775 = vmatpush3.bf16.msra.mxu1 %v2554_v35 }
 0x274   : > { %2195 = vst [vmem:[#allocation3 + $0x18] sm:$0xff] %v4912_v7  ;;  %v2144_v30 = vpop.permute.xlu1 %2143  ;;  %3744 = vmatprep.mubr.msk.bf16.mxu1 %vm1741_vm4, %v4912_v7  ;;  %3808 = vmatprep.subr.bf16.mxu1 %v4908_v25 }
 0x276   : > { %v2196_v46 = vld [vmem:[#allocation3 + $0x20] sm:$0xff]  ;;  %v2051_v36 = vpop.permute.xlu0 %2050 }
 0x277   : > { %v4921_v31 = vsel %vm4879_vm9, %v2144_v30, %v2196_v46  ;;  %2094 = vst.msk [vmem:[#allocation3 + $0x30] sm:$0xff] %vm2088_vm7, %v2051_v36 }
 0x278   : > { %2198 = vst [vmem:[#allocation3 + $0x20] sm:$0xff] %v4921_v31  ;;  %v2146_v60 = vpop.permute.xlu1 %2145  ;;  %3745 = vmatmul.mubr.msk.bf16.gmra.mrb[4].mxu1 %vm1741_vm4, %v4921_v31 }
 0x27a   : > { %v2199_v43 = vld [vmem:[#allocation3 + $0x28] sm:$0xff]  ;;  %v2053_v54 = vpop.permute.xlu0 %2052 }
 0x27b   : > { %v4929_v61 = vsel %vm4879_vm9, %v2146_v60, %v2199_v43  ;;  %2095 = vst.msk [vmem:[#allocation3 + $0x38] sm:$0xff] %vm2088_vm7, %v2053_v54 }
 0x27c   : > { %2201 = vst [vmem:[#allocation3 + $0x28] sm:$0xff] %v4929_v61  ;;  %v2148_v23 = vpop.permute.xlu1 %2147  ;;  %3748 = vmatprep.mubr.msk.bf16.mxu1 %vm1741_vm4, %v4929_v61 }
 0x27e   : > { %v2202_v24 = vld [vmem:[#allocation3 + $0x30] sm:$0xff]  ;;  %v2055_v29 = vpop.permute.xlu0 %2054 }
 0x27f   : > { %v4937_v42 = vsel %vm4879_vm9, %v2148_v23, %v2202_v24  ;;  %2096 = vst.msk [vmem:[#allocation3 + $0x40] sm:$0xff] %vm2088_vm7, %v2055_v29 }
 0x280   : > { %2204 = vst [vmem:[#allocation3 + $0x30] sm:$0xff] %v4937_v42  ;;  %v2150_v10 = vpop.permute.xlu1 %2149  ;;  %3749 = vmatmul.mubr.msk.bf16.gmra.mrb[8].mxu1 %vm1741_vm4, %v4937_v42 }
 0x282   : > { %v2205_v17 = vld [vmem:[#allocation3 + $0x38] sm:$0xff]  ;;  %v2057_v9 = vpop.permute.xlu0 %2056 }
 0x283   : > { %v4945_v44 = vsel %vm4879_vm9, %v2150_v10, %v2205_v17  ;;  %2097 = vst.msk [vmem:[#allocation3 + $0x48] sm:$0xff] %vm2088_vm7, %v2057_v9 }
 0x284   : > { %2207 = vst [vmem:[#allocation3 + $0x38] sm:$0xff] %v4945_v44  ;;  %v2152_v22 = vpop.permute.xlu1 %2151  ;;  %3752 = vmatprep.mubr.msk.bf16.mxu1 %vm1741_vm4, %v4945_v44 }
 0x286   : > { %v2208_v2 = vld [vmem:[#allocation3 + $0x40] sm:$0xff]  ;;  %v2059_v59 = vpop.permute.xlu0 %2058 }
 0x287   : > { %v4953_v13 = vsel %vm4879_vm9, %v2152_v22, %v2208_v2  ;;  %2098 = vst.msk [vmem:[#allocation3 + $0x50] sm:$0xff] %vm2088_vm7, %v2059_v59 }
 0x288   : > { %2210 = vst [vmem:[#allocation3 + $0x40] sm:$0xff] %v4953_v13  ;;  %v2154_v38 = vpop.permute.xlu1 %2153  ;;  %3753 = vmatmul.mubr.msk.bf16.gmra.mrb[12].mxu1 %vm1741_vm4, %v4953_v13 }
 0x28a   : > { %v2211_v58 = vld [vmem:[#allocation3 + $0x48] sm:$0xff]  ;;  %v2061_v45 = vpop.permute.xlu0 %2060 }
 0x28b   : > { %v4961_v47 = vsel %vm4879_vm9, %v2154_v38, %v2211_v58  ;;  %2099 = vst.msk [vmem:[#allocation3 + $0x58] sm:$0xff] %vm2088_vm7, %v2061_v45 }
 0x28c   : > { %2213 = vst [vmem:[#allocation3 + $0x48] sm:$0xff] %v4961_v47  ;;  %v2156_v48 = vpop.permute.xlu1 %2155  ;;  %3756 = vmatprep.mubr.msk.bf16.mxu1 %vm1741_vm4, %v4961_v47 }
 0x28e   : > { %v2214_v63 = vld [vmem:[#allocation3 + $0x50] sm:$0xff]  ;;  %v2063_v57 = vpop.permute.xlu0 %2062 }
 0x28f   : > { %v4969_v6 = vsel %vm4879_vm9, %v2156_v48, %v2214_v63  ;;  %2100 = vst.msk [vmem:[#allocation3 + $0x60] sm:$0xff] %vm2088_vm7, %v2063_v57 }
 0x290   : > { %2216 = vst [vmem:[#allocation3 + $0x50] sm:$0xff] %v4969_v6  ;;  %v2158_v14 = vpop.permute.xlu1 %2157  ;;  %3757 = vmatmul.mubr.msk.bf16.gmra.mrb[16].mxu1 %vm1741_vm4, %v4969_v6 }
 0x292   : > { %v2217_v18 = vld [vmem:[#allocation3 + $0x58] sm:$0xff]  ;;  %v2065_v4 = vpop.permute.xlu0 %2064 }
 0x293   : > { %v4977_v26 = vsel %vm4879_vm9, %v2158_v14, %v2217_v18  ;;  %2101 = vst.msk [vmem:[#allocation3 + $0x68] sm:$0xff] %vm2088_vm7, %v2065_v4 }
 0x294   : > { %2219 = vst [vmem:[#allocation3 + $0x58] sm:$0xff] %v4977_v26  ;;  %v2160_v33 = vpop.permute.xlu1 %2159  ;;  %3760 = vmatprep.mubr.msk.bf16.mxu1 %vm1741_vm4, %v4977_v26 }
 0x296   : > { %v2220_v40 = vld [vmem:[#allocation3 + $0x60] sm:$0xff]  ;;  %v2067_v52 = vpop.permute.xlu0 %2066 }
 0x297   : > { %v2221_v0 = vsel %vm4879_vm9, %v2160_v33, %v2220_v40  ;;  %2102 = vst.msk [vmem:[#allocation3 + $0x70] sm:$0xff] %vm2088_vm7, %v2067_v52 }
 0x298   : > { %2222 = vst [vmem:[#allocation3 + $0x60] sm:$0xff] %v2221_v0  ;;  %v2162_v27 = vpop.permute.xlu1 %2161  ;;  %3761 = vmatmul.mubr.msk.bf16.gmra.mrb[20].mxu1 %vm1741_vm4, %v2221_v0 }
 0x29a   : > { %v2223_v15 = vld [vmem:[#allocation3 + $0x68] sm:$0xff]  ;;  %v2069_v34 = vpop.permute.xlu0 %2068 }
 0x29b   : > { %v2224_v3 = vsel %vm4879_vm9, %v2162_v27, %v2223_v15  ;;  %2103 = vst.msk [vmem:[#allocation3 + $0x78] sm:$0xff] %vm2088_vm7, %v2069_v34 }
 0x29c   : > { %2225 = vst [vmem:[#allocation3 + $0x68] sm:$0xff] %v2224_v3  ;;  %3764 = vmatprep.mubr.msk.bf16.mxu1 %vm1741_vm4, %v2224_v3  ;;  %v2164_v32 = vpop.permute.xlu1 %2163 }
 0x29e   : > { %v2226_v37 = vld [vmem:[#allocation3 + $0x70] sm:$0xff]  ;;  %v2071_v51 = vpop.permute.xlu0 %2070 }
 0x29f   : > { %v2227_v56 = vsel %vm4879_vm9, %v2164_v32, %v2226_v37  ;;  %2104 = vst.msk [vmem:[#allocation3 + $0x80] sm:$0xff] %vm2088_vm7, %v2071_v51 }
 0x2a0   : > { %2228 = vst [vmem:[#allocation3 + $0x70] sm:$0xff] %v2227_v56  ;;  %3765 = vmatmul.mubr.msk.bf16.gmra.mrb[24].mxu1 %vm1741_vm4, %v2227_v56  ;;  %v2168_v11 = vpop.permute.xlu1 %2167 }
 0x2a2   : > { %v2166_v28 = vpop.permute.xlu0 %2165  ;;  %v2229_v55 = vld [vmem:[#allocation3 + $0x78] sm:$0xff] }
 0x2a3   : > { %v2230_v21 = vsel %vm4879_vm9, %v2166_v28, %v2229_v55 }
 0x2a4   : > { %2231 = vst [vmem:[#allocation3 + $0x78] sm:$0xff] %v2230_v21  ;;  %3768 = vmatprep.mubr.msk.bf16.mxu1 %vm1741_vm4, %v2230_v21 }
 0x2a6   : > { %v2232_v39 = vld [vmem:[#allocation3 + $0x80] sm:$0xff] }
 0x2a7   : > { %v2233_v41 = vsel %vm4879_vm9, %v2168_v11, %v2232_v39 }
 0x2a8   : > { %2234 = vst [vmem:[#allocation3 + $0x80] sm:$0xff] %v2233_v41  ;;  %3769 = vmatmul.mubr.msk.bf16.gmra.mrb[28].mxu1 %vm1741_vm4, %v2233_v41 }
 0x2a9   : > { %3776 = vmatprep.mubr.msk.bf16.mxu1 %vm1741_vm4, %v2235_v49 }
 0x2b0   : > { %3777 = vmatmul.mubr.msk.bf16.vlgmr.msra.gmra.mrb[0].mxu1 %vm1741_vm4, %v4885_v62  ;;  %v2733_v62 = vld [vmem:[#allocation3 + $0x88] sm:$0xff] }
 0x2b1   : > { %3809 = vmatpush3.bf16.msra.mxu1 %v4908_v25  ;;  %3780 = vmatprep.mubr.msk.bf16.mxu1 %vm1741_vm4, %v4896_v53 }
 0x2b2   : > { %3977 = vmatprep.subr.msk.bf16.mxu1 %vm2331_vm1, %v4014_v8 }
 0x2b5   : > { %3811 = vmatpush3.bf16.msra.mxu1 %v2796_v19 }
 0x2b8   : > { %3781 = vmatmul.mubr.msk.bf16.gmra.mrb[4].mxu1 %vm1741_vm4, %v4912_v7 }
 0x2b9   : > { %3784 = vmatprep.mubr.msk.bf16.mxu1 %vm1741_vm4, %v4921_v31 }
 0x2c0   : > { %3785 = vmatmul.mubr.msk.bf16.gmra.mrb[8].mxu1 %vm1741_vm4, %v4929_v61 }
 0x2c1   : > { %3788 = vmatprep.mubr.msk.bf16.mxu1 %vm1741_vm4, %v4937_v42 }
 0x2c8   : > { %3789 = vmatmul.mubr.msk.bf16.gmra.mrb[12].mxu1 %vm1741_vm4, %v4945_v44 }
 0x2c9   : > { %3792 = vmatprep.mubr.msk.bf16.mxu1 %vm1741_vm4, %v4953_v13 }
 0x2d0   : > { %3793 = vmatmul.mubr.msk.bf16.gmra.mrb[16].mxu1 %vm1741_vm4, %v4961_v47 }
 0x2d1   : > { %3796 = vmatprep.mubr.msk.bf16.mxu1 %vm1741_vm4, %v4969_v6 }
 0x2d8   : > { %3797 = vmatmul.mubr.msk.bf16.gmra.mrb[20].mxu1 %vm1741_vm4, %v4977_v26 }
 0x2d9   : > { %3800 = vmatprep.mubr.msk.bf16.mxu1 %vm1741_vm4, %v2221_v0 }
 0x2e0   : > { %3801 = vmatmul.mubr.msk.bf16.gmra.mrb[24].mxu1 %vm1741_vm4, %v2224_v3 }
 0x2e1   : > { %3804 = vmatprep.mubr.msk.bf16.mxu1 %vm1741_vm4, %v2227_v56 }
 0x2e8   : > { %3805 = vmatmul.mubr.msk.bf16.gmra.mrb[28].mxu1 %vm1741_vm4, %v2230_v21 }
 0x2e9   : > { %3812 = vmatprep.mubr.msk.bf16.mxu1 %vm1741_vm4, %v4896_v53  ;;  %v5068_v53 = vld [vmem:[%s5214_s6] ss:$0 sm:$0xff] }
 0x2f0   : > { %3813 = vmatmul.mubr.msk.bf16.vlgmr.msra.gmra.mrb[0].mxu1 %vm1741_vm4, %v4912_v7 }
 0x2f1   : > { %3816 = vmatprep.mubr.msk.bf16.mxu1 %vm1741_vm4, %v4921_v31 }
 0x2f8   : > { %3817 = vmatmul.mubr.msk.bf16.gmra.mrb[4].mxu1 %vm1741_vm4, %v4929_v61 }
 0x2f9   : > { %3820 = vmatprep.mubr.msk.bf16.mxu1 %vm1741_vm4, %v4937_v42 }
 0x300   : > { %3821 = vmatmul.mubr.msk.bf16.gmra.mrb[8].mxu1 %vm1741_vm4, %v4945_v44 }
 0x301   : > { %3824 = vmatprep.mubr.msk.bf16.mxu1 %vm1741_vm4, %v4953_v13 }
 0x308   : > { %3825 = vmatmul.mubr.msk.bf16.gmra.mrb[12].mxu1 %vm1741_vm4, %v4961_v47 }
 0x309   : > { %3828 = vmatprep.mubr.msk.bf16.mxu1 %vm1741_vm4, %v4969_v6 }
 0x310   : > { %3829 = vmatmul.mubr.msk.bf16.gmra.mrb[16].mxu1 %vm1741_vm4, %v4977_v26 }
 0x311   : > { %3832 = vmatprep.mubr.msk.bf16.mxu1 %vm1741_vm4, %v2221_v0 }
 0x318   : > { %3833 = vmatmul.mubr.msk.bf16.gmra.mrb[20].mxu1 %vm1741_vm4, %v2224_v3 }
 0x319   : > { %3836 = vmatprep.mubr.msk.bf16.mxu1 %vm1741_vm4, %v2227_v56 }
 0x320   : > { %3837 = vmatmul.mubr.msk.bf16.gmra.mrb[24].mxu1 %vm1741_vm4, %v2230_v21 }
 0x321   : > { %3840 = vmatprep.mubr.msk.bf16.mxu1 %vm1741_vm4, %v2233_v41 }
 0x328   : > { %3841 = vmatmul.mubr.msk.bf16.gmra.mrb[28].mxu1 %vm1741_vm4, %v2733_v62 }
 0x3c3   : > { %v3814_v50 = vpop.f32.mrb[0].mxu1 }
 0x3c4   : > { %v3000_v5 = vmul.f32 %v3814_v50, %v5063_v12  ;;  %v2832_v20 = vpop.f32.mrb[1].mxu1 }
 0x3c5   : > { %v2998_v35 = vmul.f32 %v5063_v12, %v2832_v20  ;;  %v3815_v25 = vpop.f32.mrb[2].mxu1 }
 0x3c6   : > { %v3039_v16 = vadd.f32 %v5068_v53, %v3000_v5  ;;  %v3001_v1 = vmul.f32 %v3815_v25, %v5063_v12  ;;  %v2835_v7 = vpop.f32.mrb[3].mxu1 }
 0x3c7   : > { %v3037_v30 = vadd.f32 %v5068_v53, %v2998_v35  ;;  %v2999_v46 = vmul.f32 %v5063_v12, %v2835_v7 }
 0x3c8   : > { %v3071_v36 = vmax.f32 %v3039_v16, 0.0  ;;  %v3040_v31 = vadd.f32 %v5068_v53, %v3001_v1 }
 0x3c9   : > { %v3069_v60 = vmax.f32 %v3037_v30, 0.0  ;;  %v3038_v43 = vadd.f32 %v5068_v53, %v2999_v46 }
 0x3ca   : > { %v3499_v54 = vpack.c.bf16 %v3071_v36, %v3071_v36  ;;  %v3072_v61 = vmax.f32 %v3040_v31, 0.0 }
 0x3cb   : > { %v3497_v23 = vpack.c.bf16 %v3069_v60, %v3069_v60  ;;  %v3070_v24 = vmax.f32 %v3038_v43, 0.0  ;;  %v3818_v29 = vpop.f32.mrb[4].mxu1 }
 0x3cc   : > { %3232 = vst.msk [vmem:[%s5082_s18 + $0x8] sm:$0xf] %vm3229_vm10, %v3499_v54  ;;  %v3500_v42 = vpack.c.bf16 %v3072_v61, %v3072_v61  ;;  %v3004_v10 = vmul.f32 %v3818_v29, %v5063_v12  ;;  %v2848_v17 = vpop.f32.mrb[5].mxu1 }
 0x3cd   : > { %3230 = vst.msk [vmem:[%s5082_s18] sm:$0xf] %vm3229_vm10, %v3497_v23  ;;  %v3498_v9 = vpack.c.bf16 %v3070_v24, %v3070_v24  ;;  %v3002_v44 = vmul.f32 %v5063_v12, %v2848_v17  ;;  %v3819_v22 = vpop.f32.mrb[6].mxu1 }
 0x3ce   : > { %3233 = vst.msk [vmem:[%s5082_s18 + $0xc] sm:$0xf] %vm3229_vm10, %v3500_v42  ;;  %v3043_v2 = vadd.f32 %v5068_v53, %v3004_v10  ;;  %v3005_v59 = vmul.f32 %v3819_v22, %v5063_v12  ;;  %v2851_v13 = vpop.f32.mrb[7].mxu1 }
 0x3cf   : > { %3231 = vst.msk [vmem:[%s5082_s18 + $0x4] sm:$0xf] %vm3229_vm10, %v3498_v9  ;;  %v3041_v38 = vadd.f32 %v5068_v53, %v3002_v44  ;;  %v3003_v58 = vmul.f32 %v5063_v12, %v2851_v13 }
 0x3d0   : > { %v3075_v45 = vmax.f32 %v3043_v2, 0.0  ;;  %v3044_v47 = vadd.f32 %v5068_v53, %v3005_v59 }
 0x3d1   : > { %v3073_v48 = vmax.f32 %v3041_v38, 0.0  ;;  %v3042_v63 = vadd.f32 %v5068_v53, %v3003_v58 }
 0x3d2   : > { %v3503_v57 = vpack.c.bf16 %v3075_v45, %v3075_v45  ;;  %v3076_v6 = vmax.f32 %v3044_v47, 0.0 }
 0x3d3   : > { %v3501_v14 = vpack.c.bf16 %v3073_v48, %v3073_v48  ;;  %v3074_v18 = vmax.f32 %v3042_v63, 0.0  ;;  %v3822_v4 = vpop.f32.mrb[8].mxu1 }
 0x3d4   : > { %3236 = vst.msk [vmem:[%s5082_s18 + $0x18] sm:$0xf] %vm3229_vm10, %v3503_v57  ;;  %v3504_v26 = vpack.c.bf16 %v3076_v6, %v3076_v6  ;;  %v3008_v33 = vmul.f32 %v3822_v4, %v5063_v12  ;;  %v2864_v40 = vpop.f32.mrb[9].mxu1 }
 0x3d5   : > { %3234 = vst.msk [vmem:[%s5082_s18 + $0x10] sm:$0xf] %vm3229_vm10, %v3501_v14  ;;  %v3502_v52 = vpack.c.bf16 %v3074_v18, %v3074_v18  ;;  %v3006_v0 = vmul.f32 %v5063_v12, %v2864_v40  ;;  %v3823_v27 = vpop.f32.mrb[10].mxu1 }
 0x3d6   : > { %3237 = vst.msk [vmem:[%s5082_s18 + $0x1c] sm:$0xf] %vm3229_vm10, %v3504_v26  ;;  %v3047_v15 = vadd.f32 %v5068_v53, %v3008_v33  ;;  %v3009_v34 = vmul.f32 %v3823_v27, %v5063_v12  ;;  %v2867_v3 = vpop.f32.mrb[11].mxu1 }
 0x3d7   : > { %3235 = vst.msk [vmem:[%s5082_s18 + $0x14] sm:$0xf] %vm3229_vm10, %v3502_v52  ;;  %v3045_v37 = vadd.f32 %v5068_v53, %v3006_v0  ;;  %v3007_v32 = vmul.f32 %v5063_v12, %v2867_v3 }
 0x3d8   : > { %v3079_v51 = vmax.f32 %v3047_v15, 0.0  ;;  %v3048_v56 = vadd.f32 %v5068_v53, %v3009_v34 }
 0x3d9   : > { %v3077_v28 = vmax.f32 %v3045_v37, 0.0  ;;  %v3046_v55 = vadd.f32 %v5068_v53, %v3007_v32 }
 0x3da   : > { %v3507_v21 = vpack.c.bf16 %v3079_v51, %v3079_v51  ;;  %v3080_v11 = vmax.f32 %v3048_v56, 0.0 }
 0x3db   : > { %v3505_v39 = vpack.c.bf16 %v3077_v28, %v3077_v28  ;;  %v3078_v49 = vmax.f32 %v3046_v55, 0.0  ;;  %v3826_v41 = vpop.f32.mrb[12].mxu1 }
 0x3dc   : > { %3240 = vst.msk [vmem:[%s5082_s18 + $0x28] sm:$0xf] %vm3229_vm10, %v3507_v21  ;;  %v3508_v8 = vpack.c.bf16 %v3080_v11, %v3080_v11  ;;  %v3012_v19 = vmul.f32 %v3826_v41, %v5063_v12  ;;  %v2880_v62 = vpop.f32.mrb[13].mxu1 }
 0x3dd   : > { %3238 = vst.msk [vmem:[%s5082_s18 + $0x20] sm:$0xf] %vm3229_vm10, %v3505_v39  ;;  %v3506_v50 = vpack.c.bf16 %v3078_v49, %v3078_v49  ;;  %v3010_v5 = vmul.f32 %v5063_v12, %v2880_v62  ;;  %v3827_v20 = vpop.f32.mrb[14].mxu1 }
 0x3de   : > { %3241 = vst.msk [vmem:[%s5082_s18 + $0x2c] sm:$0xf] %vm3229_vm10, %v3508_v8  ;;  %v3051_v35 = vadd.f32 %v5068_v53, %v3012_v19  ;;  %v3013_v25 = vmul.f32 %v3827_v20, %v5063_v12  ;;  %v2883_v16 = vpop.f32.mrb[15].mxu1 }
 0x3df   : > { %3239 = vst.msk [vmem:[%s5082_s18 + $0x24] sm:$0xf] %vm3229_vm10, %v3506_v50  ;;  %v3049_v1 = vadd.f32 %v5068_v53, %v3010_v5  ;;  %v3011_v7 = vmul.f32 %v5063_v12, %v2883_v16 }
 0x3e0   : > { %v3083_v30 = vmax.f32 %v3051_v35, 0.0  ;;  %v3052_v46 = vadd.f32 %v5068_v53, %v3013_v25 }
 0x3e1   : > { %v3081_v36 = vmax.f32 %v3049_v1, 0.0  ;;  %v3050_v31 = vadd.f32 %v5068_v53, %v3011_v7 }
 0x3e2   : > { %v3511_v60 = vpack.c.bf16 %v3083_v30, %v3083_v30  ;;  %v3084_v43 = vmax.f32 %v3052_v46, 0.0 }
 0x3e3   : > { %v3509_v54 = vpack.c.bf16 %v3081_v36, %v3081_v36  ;;  %v3082_v61 = vmax.f32 %v3050_v31, 0.0  ;;  %v3830_v23 = vpop.f32.mrb[16].mxu1 }
 0x3e4   : > { %3244 = vst.msk [vmem:[%s5082_s18 + $0x38] sm:$0xf] %vm3229_vm10, %v3511_v60  ;;  %v3512_v24 = vpack.c.bf16 %v3084_v43, %v3084_v43  ;;  %v3016_v29 = vmul.f32 %v3830_v23, %v5063_v12  ;;  %v2896_v42 = vpop.f32.mrb[17].mxu1 }
 0x3e5   : > { %3242 = vst.msk [vmem:[%s5082_s18 + $0x30] sm:$0xf] %vm3229_vm10, %v3509_v54  ;;  %v3510_v10 = vpack.c.bf16 %v3082_v61, %v3082_v61  ;;  %v3014_v17 = vmul.f32 %v5063_v12, %v2896_v42  ;;  %v3831_v9 = vpop.f32.mrb[18].mxu1 }
 0x3e6   : > { %3245 = vst.msk [vmem:[%s5082_s18 + $0x3c] sm:$0xf] %vm3229_vm10, %v3512_v24  ;;  %v3055_v44 = vadd.f32 %v5068_v53, %v3016_v29  ;;  %v3017_v22 = vmul.f32 %v3831_v9, %v5063_v12  ;;  %v2899_v2 = vpop.f32.mrb[19].mxu1 }
 0x3e7   : > { %3243 = vst.msk [vmem:[%s5082_s18 + $0x34] sm:$0xf] %vm3229_vm10, %v3510_v10  ;;  %v3053_v59 = vadd.f32 %v5068_v53, %v3014_v17  ;;  %v3015_v13 = vmul.f32 %v5063_v12, %v2899_v2 }
 0x3e8   : > { %v3087_v38 = vmax.f32 %v3055_v44, 0.0  ;;  %v3056_v58 = vadd.f32 %v5068_v53, %v3017_v22 }
 0x3e9   : > { %v3085_v45 = vmax.f32 %v3053_v59, 0.0  ;;  %v3054_v47 = vadd.f32 %v5068_v53, %v3015_v13 }
 0x3ea   : > { %v3515_v48 = vpack.c.bf16 %v3087_v38, %v3087_v38  ;;  %v3088_v63 = vmax.f32 %v3056_v58, 0.0 }
 0x3eb   : > { %v3513_v57 = vpack.c.bf16 %v3085_v45, %v3085_v45  ;;  %v3086_v6 = vmax.f32 %v3054_v47, 0.0  ;;  %v3834_v14 = vpop.f32.mrb[20].mxu1 }
 0x3ec   : > { %3248 = vst.msk [vmem:[%s5082_s18 + $0x48] sm:$0xf] %vm3229_vm10, %v3515_v48  ;;  %v3516_v18 = vpack.c.bf16 %v3088_v63, %v3088_v63  ;;  %v3020_v4 = vmul.f32 %v3834_v14, %v5063_v12  ;;  %v2912_v26 = vpop.f32.mrb[21].mxu1 }
 0x3ed   : > { %3246 = vst.msk [vmem:[%s5082_s18 + $0x40] sm:$0xf] %vm3229_vm10, %v3513_v57  ;;  %v3514_v33 = vpack.c.bf16 %v3086_v6, %v3086_v6  ;;  %v3018_v40 = vmul.f32 %v5063_v12, %v2912_v26  ;;  %v3835_v52 = vpop.f32.mrb[22].mxu1 }
 0x3ee   : > { %3249 = vst.msk [vmem:[%s5082_s18 + $0x4c] sm:$0xf] %vm3229_vm10, %v3516_v18  ;;  %v3059_v0 = vadd.f32 %v5068_v53, %v3020_v4  ;;  %v3021_v27 = vmul.f32 %v3835_v52, %v5063_v12  ;;  %v2915_v15 = vpop.f32.mrb[23].mxu1 }
 0x3ef   : > { %3247 = vst.msk [vmem:[%s5082_s18 + $0x44] sm:$0xf] %vm3229_vm10, %v3514_v33  ;;  %v3057_v34 = vadd.f32 %v5068_v53, %v3018_v40  ;;  %v3019_v3 = vmul.f32 %v5063_v12, %v2915_v15 }
 0x3f0   : > { %v3091_v37 = vmax.f32 %v3059_v0, 0.0  ;;  %v3060_v32 = vadd.f32 %v5068_v53, %v3021_v27 }
 0x3f1   : > { %v3089_v51 = vmax.f32 %v3057_v34, 0.0  ;;  %v3058_v56 = vadd.f32 %v5068_v53, %v3019_v3 }
 0x3f2   : > { %v3519_v28 = vpack.c.bf16 %v3091_v37, %v3091_v37  ;;  %v3092_v55 = vmax.f32 %v3060_v32, 0.0 }
 0x3f3   : > { %v3517_v21 = vpack.c.bf16 %v3089_v51, %v3089_v51  ;;  %v3090_v11 = vmax.f32 %v3058_v56, 0.0  ;;  %v3838_v39 = vpop.f32.mrb[24].mxu1 }
 0x3f4   : > { %3252 = vst.msk [vmem:[%s5082_s18 + $0x58] sm:$0xf] %vm3229_vm10, %v3519_v28  ;;  %v3520_v49 = vpack.c.bf16 %v3092_v55, %v3092_v55  ;;  %v3024_v41 = vmul.f32 %v3838_v39, %v5063_v12  ;;  %v2928_v8 = vpop.f32.mrb[25].mxu1 }
 0x3f5   : > { %3250 = vst.msk [vmem:[%s5082_s18 + $0x50] sm:$0xf] %vm3229_vm10, %v3517_v21  ;;  %v3518_v19 = vpack.c.bf16 %v3090_v11, %v3090_v11  ;;  %v3022_v62 = vmul.f32 %v5063_v12, %v2928_v8  ;;  %v3839_v50 = vpop.f32.mrb[26].mxu1 }
 0x3f6   : > { %3253 = vst.msk [vmem:[%s5082_s18 + $0x5c] sm:$0xf] %vm3229_vm10, %v3520_v49  ;;  %v3063_v5 = vadd.f32 %v5068_v53, %v3024_v41  ;;  %v3025_v20 = vmul.f32 %v3839_v50, %v5063_v12  ;;  %v2931_v35 = vpop.f32.mrb[27].mxu1 }
 0x3f7   : > { %3251 = vst.msk [vmem:[%s5082_s18 + $0x54] sm:$0xf] %vm3229_vm10, %v3518_v19  ;;  %v3061_v25 = vadd.f32 %v5068_v53, %v3022_v62  ;;  %v3023_v16 = vmul.f32 %v5063_v12, %v2931_v35 }
 0x3f8   : > { %v3095_v1 = vmax.f32 %v3063_v5, 0.0  ;;  %v3064_v7 = vadd.f32 %v5068_v53, %v3025_v20 }
 0x3f9   : > { %v3093_v30 = vmax.f32 %v3061_v25, 0.0  ;;  %v3062_v46 = vadd.f32 %v5068_v53, %v3023_v16 }
 0x3fa   : > { %v3523_v36 = vpack.c.bf16 %v3095_v1, %v3095_v1  ;;  %v3096_v31 = vmax.f32 %v3064_v7, 0.0 }
 0x3fb   : > { %v3521_v60 = vpack.c.bf16 %v3093_v30, %v3093_v30  ;;  %v3094_v43 = vmax.f32 %v3062_v46, 0.0  ;;  %v3842_v54 = vpop.f32.mrb[28].mxu1 }
 0x3fc   : > { %3256 = vst.msk [vmem:[%s5082_s18 + $0x68] sm:$0xf] %vm3229_vm10, %v3523_v36  ;;  %v3524_v61 = vpack.c.bf16 %v3096_v31, %v3096_v31  ;;  %v3028_v23 = vmul.f32 %v3842_v54, %v5063_v12  ;;  %v2944_v24 = vpop.f32.mrb[29].mxu1 }
 0x3fd   : > { %3254 = vst.msk [vmem:[%s5082_s18 + $0x60] sm:$0xf] %vm3229_vm10, %v3521_v60  ;;  %v3522_v29 = vpack.c.bf16 %v3094_v43, %v3094_v43  ;;  %v3026_v42 = vmul.f32 %v5063_v12, %v2944_v24  ;;  %v3843_v10 = vpop.f32.mrb[30].mxu1 }
 0x3fe   : > { %3257 = vst.msk [vmem:[%s5082_s18 + $0x6c] sm:$0xf] %vm3229_vm10, %v3524_v61  ;;  %v3067_v17 = vadd.f32 %v5068_v53, %v3028_v23  ;;  %v3029_v9 = vmul.f32 %v3843_v10, %v5063_v12  ;;  %v2947_v44 = vpop.f32.mrb[31].mxu1 }
 0x3ff   : > { %3255 = vst.msk [vmem:[%s5082_s18 + $0x64] sm:$0xf] %vm3229_vm10, %v3522_v29  ;;  %v3065_v22 = vadd.f32 %v5068_v53, %v3026_v42  ;;  %v3027_v2 = vmul.f32 %v5063_v12, %v2947_v44 }
 0x400   : > { %v3099_v59 = vmax.f32 %v3067_v17, 0.0  ;;  %v3068_v13 = vadd.f32 %v5068_v53, %v3029_v9 }
 0x401   : > { %v3097_v38 = vmax.f32 %v3065_v22, 0.0  ;;  %v3066_v58 = vadd.f32 %v5068_v53, %v3027_v2 }
 0x402   : > { %v3527_v45 = vpack.c.bf16 %v3099_v59, %v3099_v59  ;;  %v3100_v47 = vmax.f32 %v3068_v13, 0.0 }
 0x403   : > { %v3525_v48 = vpack.c.bf16 %v3097_v38, %v3097_v38  ;;  %v3098_v63 = vmax.f32 %v3066_v58, 0.0 }
 0x404   : > { %3260 = vst.msk [vmem:[%s5082_s18 + $0x78] sm:$0xf] %vm3229_vm10, %v3527_v45  ;;  %v3528_v57 = vpack.c.bf16 %v3100_v47, %v3100_v47 }
 0x405   : > { %3258 = vst.msk [vmem:[%s5082_s18 + $0x70] sm:$0xf] %vm3229_vm10, %v3525_v48  ;;  %v3526_v6 = vpack.c.bf16 %v3098_v63, %v3098_v63 }
 0x406   : > { %3261 = vst.msk [vmem:[%s5082_s18 + $0x7c] sm:$0xf] %vm3229_vm10, %v3528_v57 }
 0x407   : > { %3259 = vst.msk [vmem:[%s5082_s18 + $0x74] sm:$0xf] %vm3229_vm10, %v3526_v6 }
 0x408 PF: > { %s17_s24 = sadd.s32 1, %s4021_s24  }
 0x409   : > { %p14_p4 = scmp.ge.s32.totalorder %s17_s24, 4  }
 0x40b   :  { %16 = sbr.rel (!%p14_p4) target bundleno = 1 (0x1), region = 88 }

</bundles_post_ra>
